<compile_context>
chip_gen: v5e
topology: v5e:2x2
jax: 0.10.0
libtpu: 0.0.40
codegen_flags: <defaults>
</compile_context>

<pallas_src>
import jax
import jax.numpy as jnp
from jax.experimental import pallas as pl
from jax.experimental.pallas import tpu as pltpu

EPS = 1e-5      # nn.BatchNorm2d default eps
LANE = 128      # TPU lane width


def _round_up(x, m):
    return (x + m - 1) // m * m


def _pick_row_tile(h):
    """Largest convenient row-tile size that divides H (>= 2 tiles if possible)."""
    for th in (64, 32, 16, 8, 4, 2, 1):
        if h % th == 0 and h // th >= 2:
            return th
    return h


def conv_stats_kernel(x3_ref, w3_ref, y_ref, stats_ref):
    """3x3 conv for one (image, row-tile) block + per-tile channel statistics.

    x3_ref:    (1, TH, W+2, 3*Cp)  input, the 3 dy taps pre-folded into channels
                                   (so row tiles need no halo)
    w3_ref:    (3, 3*Cp, Cop)      weight, one (3*Cp, Cop) matrix per dx tap
    y_ref:     (1, TH, W, Cop)     conv output (bf16 storage, f32 accumulation)
    stats_ref: (1, 1, 2, Cop)      per-tile [sum, sum-of-squares] over pixels
    """
    _, TH, W, Cop = y_ref.shape
    K3 = x3_ref.shape[-1]

    x3 = x3_ref[0]                                     # (TH, W+2, 3*Cp)
    acc = jnp.zeros((TH * W, Cop), jnp.float32)
    # Three MXU matmuls with K = 3*Cin_pad (instead of nine K = Cin matmuls).
    # NOTE(perf): for large tiles hold `acc` in an explicit VMEM scratch instead.
    for dx in range(3):
        lhs = x3[:, dx:dx + W, :].reshape(TH * W, K3)  # lane-preserving reshape
        acc = acc + jnp.dot(lhs, w3_ref[dx], preferred_element_type=jnp.float32)

    y_ref[0] = acc.reshape(TH, W, Cop).astype(y_ref.dtype)

    # Partial batch-norm statistics for this tile (reduced across tiles by XLA,
    # keeping the whole grid "parallel" -> megacore-shardable).
    s = jnp.sum(acc, axis=0, keepdims=True)            # (1, Cop)
    ss = jnp.sum(acc * acc, axis=0, keepdims=True)     # (1, Cop)
    stats_ref[0, 0] = jnp.concatenate([s, ss], axis=0)


def bn_relu_kernel(y_ref, scale_ref, shift_ref, o_ref):
    """Apply precomputed BN scale/shift + ReLU. Pure FMA + max, lane-dense."""
    y = y_ref[0].astype(jnp.float32)                   # (TH, W, Cop)
    out = jnp.maximum(y * scale_ref[...] + shift_ref[...], 0.0)
    o_ref[0] = out.astype(o_ref.dtype)


def vgg_block(x_nchw, w_hwio, gamma, beta, *, interm_dtype=jnp.bfloat16):
    """VGGBlock forward: (N, Cin, H, W) -> (N, Cout, H, W). Training-mode BN."""
    N, Cin, H, W = x_nchw.shape
    Cout = w_hwio.shape[-1]
    Cp = _round_up(Cin, LANE)      # padded input channels  (lane-dense MXU K)
    Cop = _round_up(Cout, LANE)    # padded output channels (lane-dense MXU N)
    TH = _pick_row_tile(H)
    HT = H // TH

    # ---- wrapper-side prep (plain XLA) --------------------------------------
    # NCHW -> NHWC, zero-pad channels to a lane multiple, zero-pad spatially by 1.
    x = jnp.transpose(x_nchw, (0, 2, 3, 1)).astype(jnp.float32)
    x = jnp.pad(x, ((0, 0), (0, 0), (0, 0), (0, Cp - Cin)))
    xp = jnp.pad(x, ((0, 0), (1, 1), (1, 1), (0, 0)))            # (N, H+2, W+2, Cp)
    # Fold the 3 dy taps into channels: x3[n, h, wp, dy*Cp + c] = xp[n, h+dy, wp, c]
    x3 = jnp.concatenate([xp[:, dy:dy + H] for dy in range(3)], axis=-1)  # (N,H,W+2,3Cp)

    # Weight (3,3,Cin,Cout) -> per-dx (3*Cp, Cop) matrices, dy-major to match x3.
    wpad = jnp.pad(w_hwio.astype(jnp.float32),
                   ((0, 0), (0, 0), (0, Cp - Cin), (0, Cop - Cout)))
    w3 = jnp.transpose(wpad, (1, 0, 2, 3)).reshape(3, 3 * Cp, Cop)

    conv_flops = 2 * N * H * W * 9 * Cp * Cop
    conv_bytes = (x3.size + w3.size) * 4 + N * H * W * Cop * 2 + N * HT * 2 * Cop * 4

    # ---- pass 1: conv + per-tile partial stats (fully parallel grid) --------
    y, pstats = pl.pallas_call(
        conv_stats_kernel,
        out_shape=(
            jax.ShapeDtypeStruct((N, H, W, Cop), interm_dtype),
            jax.ShapeDtypeStruct((N, HT, 2, Cop), jnp.float32),
        ),
        grid_spec=pltpu.PrefetchScalarGridSpec(
            num_scalar_prefetch=0,
            grid=(N, HT),
            in_specs=[
                pl.BlockSpec((1, TH, W + 2, 3 * Cp), lambda n, t: (n, t, 0, 0)),
                pl.BlockSpec((3, 3 * Cp, Cop), lambda n, t: (0, 0, 0)),
            ],
            out_specs=[
                pl.BlockSpec((1, TH, W, Cop), lambda n, t: (n, t, 0, 0)),
                pl.BlockSpec((1, 1, 2, Cop), lambda n, t: (n, t, 0, 0)),
            ],
        ),
        compiler_params=pltpu.CompilerParams(
            dimension_semantics=("parallel", "parallel")),
        cost_estimate=pl.CostEstimate(flops=conv_flops, transcendentals=0,
                                      bytes_accessed=conv_bytes),
    )(x3, w3)

    # ---- wrapper: reduce partial stats, precompute BN scale/shift -----------
    stats = jnp.sum(pstats, axis=(0, 1))                    # (2, Cop)
    count = jnp.float32(N * H * W)
    mean = stats[0] / count
    var = jnp.maximum(stats[1] / count - mean * mean, 0.0)  # biased var, clamped
    gamma_p = jnp.pad(gamma.astype(jnp.float32), (0, Cop - Cout))
    beta_p = jnp.pad(beta.astype(jnp.float32), (0, Cop - Cout))
    scale = (gamma_p * jax.lax.rsqrt(var + EPS)).reshape(1, Cop)
    shift = (beta_p - mean * scale[0]).reshape(1, Cop)

    bn_bytes = N * H * W * Cop * (2 + 4) + 2 * Cop * 4

    # ---- pass 2: BN apply + ReLU (pure FMA + max) ----------------------------
    out_nhwc = pl.pallas_call(
        bn_relu_kernel,
        out_shape=jax.ShapeDtypeStruct((N, H, W, Cop), jnp.float32),
        grid_spec=pltpu.PrefetchScalarGridSpec(
            num_scalar_prefetch=0,
            grid=(N, HT),
            in_specs=[
                pl.BlockSpec((1, TH, W, Cop), lambda n, t: (n, t, 0, 0)),
                pl.BlockSpec((1, Cop), lambda n, t: (0, 0)),
                pl.BlockSpec((1, Cop), lambda n, t: (0, 0)),
            ],
            out_specs=pl.BlockSpec((1, TH, W, Cop), lambda n, t: (n, t, 0, 0)),
        ),
        compiler_params=pltpu.CompilerParams(
            dimension_semantics=("parallel", "parallel")),
        cost_estimate=pl.CostEstimate(flops=2 * N * H * W * Cop, transcendentals=0,
                                      bytes_accessed=bn_bytes),
    )(y, scale, shift)

    # Drop channel padding, NHWC -> NCHW to match the PyTorch convention.
    return jnp.transpose(out_nhwc[..., :Cout], (0, 3, 1, 2))


if __name__ == "__main__":
    N, Cin, Cout, H, W = 2, 4, 8, 16, 16

    key = jax.random.PRNGKey(0)
    k1, k2 = jax.random.split(key)
    x = jax.random.normal(k1, (N, Cin, H, W), jnp.float32)
    w = jax.random.normal(k2, (3, 3, Cin, Cout), jnp.float32) * 0.1
    gamma = jnp.ones((Cout,), jnp.float32)   # BatchNorm2d default weight
    beta = jnp.zeros((Cout,), jnp.float32)   # BatchNorm2d default bias

    out = jax.block_until_ready(jax.jit(vgg_block)(x, w, gamma, beta))

    # Pure-JAX reference (same semantics as the PyTorch VGGBlock in training mode).
    x_nhwc = jnp.transpose(x, (0, 2, 3, 1))
    conv_ref = jax.lax.conv_general_dilated(
        x_nhwc, w, window_strides=(1, 1), padding="SAME",
        dimension_numbers=("NHWC", "HWIO", "NHWC"))
    mean = jnp.mean(conv_ref, axis=(0, 1, 2))
    var = jnp.mean((conv_ref - mean) ** 2, axis=(0, 1, 2))   # biased variance
    ref = jnp.maximum((conv_ref - mean) / jnp.sqrt(var + EPS) * gamma + beta, 0.0)
    ref = jnp.transpose(ref, (0, 3, 1, 2))

    assert out.shape == (N, Cout, H, W)
    err = float(jnp.max(jnp.abs(out - ref)))
    # bf16 intermediate storage -> looser tolerance than a pure-f32 pipeline.
    assert jnp.allclose(out, ref, atol=2e-2, rtol=2e-2), err
    print("KERNEL_OK")
</pallas_src>

<mosaic_0001>
module attributes {stable_mosaic.version = 11 : i64} {
  func.func @conv_stats_kernel(%arg0: i32, %arg1: i32, %arg2: memref<1x8x18x384xf32, #tpu.memory_space<vmem>>, %arg3: memref<3x384x128xf32, #tpu.memory_space<vmem>>, %arg4: memref<1x8x16x128xbf16, #tpu.memory_space<vmem>>, %arg5: memref<1x1x2x128xf32, #tpu.memory_space<vmem>>) attributes {dimension_semantics = [#tpu.dimension_semantics<parallel>, #tpu.dimension_semantics<parallel>], iteration_bounds = array<i64: 2, 2>, scalar_prefetch = 0 : i64, scratch_operands = 0 : i64, tpu.core_type = #tpu.core_type<tc>, window_params = [{transform_indices = @transform_0, window_bounds = array<i64: 1, 8, 18, 384>}, {pipeline_mode = #tpu.pipeline_mode<synchronous>, transform_indices = @transform_1, window_bounds = array<i64: 3, 384, 128>}, {transform_indices = @transform_2, window_bounds = array<i64: 1, 8, 16, 128>}, {transform_indices = @transform_3, window_bounds = array<i64: 1, 1, 2, 128>}]} {
    %c0 = arith.constant 0 : index
    %c0_0 = arith.constant 0 : index
    %c0_1 = arith.constant 0 : index
    %c0_2 = arith.constant 0 : index
    %0 = vector.load %arg2[%c0, %c0_0, %c0_1, %c0_2] : memref<1x8x18x384xf32, #tpu.memory_space<vmem>>, vector<1x8x18x384xf32>
    %1 = vector.shape_cast %0 : vector<1x8x18x384xf32> to vector<8x18x384xf32>
    %cst = arith.constant 0.000000e+00 : f32
    %2 = vector.broadcast %cst : f32 to vector<128x128xf32>
    %3 = vector.extract_strided_slice %1 {offsets = [0, 0, 0], sizes = [8, 16, 384], strides = [1, 1, 1]} : vector<8x18x384xf32> to vector<8x16x384xf32>
    %4 = vector.shape_cast %3 : vector<8x16x384xf32> to vector<128x384xf32>
    %c0_3 = arith.constant 0 : index
    %c0_4 = arith.constant 0 : index
    %c0_5 = arith.constant 0 : index
    %5 = vector.load %arg3[%c0_3, %c0_4, %c0_5] : memref<3x384x128xf32, #tpu.memory_space<vmem>>, vector<1x384x128xf32>
    %6 = vector.shape_cast %5 : vector<1x384x128xf32> to vector<384x128xf32>
    %cst_6 = arith.constant dense<0.000000e+00> : vector<128x128xf32>
    %7 = tpu.matmul %4, %6, %cst_6 {dimension_numbers = #tpu.dot_dimension_numbers<[1], [0], [0], [1], [0, 0, 1, 1], [], []>} : vector<128x384xf32>, vector<384x128xf32>, vector<128x128xf32> -> vector<128x128xf32>
    %8 = arith.addf %2, %7 : vector<128x128xf32>
    %9 = vector.extract_strided_slice %1 {offsets = [0, 1, 0], sizes = [8, 16, 384], strides = [1, 1, 1]} : vector<8x18x384xf32> to vector<8x16x384xf32>
    %10 = vector.shape_cast %9 : vector<8x16x384xf32> to vector<128x384xf32>
    %c1 = arith.constant 1 : index
    %c0_7 = arith.constant 0 : index
    %c0_8 = arith.constant 0 : index
    %11 = vector.load %arg3[%c1, %c0_7, %c0_8] : memref<3x384x128xf32, #tpu.memory_space<vmem>>, vector<1x384x128xf32>
    %12 = vector.shape_cast %11 : vector<1x384x128xf32> to vector<384x128xf32>
    %cst_9 = arith.constant dense<0.000000e+00> : vector<128x128xf32>
    %13 = tpu.matmul %10, %12, %cst_9 {dimension_numbers = #tpu.dot_dimension_numbers<[1], [0], [0], [1], [0, 0, 1, 1], [], []>} : vector<128x384xf32>, vector<384x128xf32>, vector<128x128xf32> -> vector<128x128xf32>
    %14 = arith.addf %8, %13 : vector<128x128xf32>
    %15 = vector.extract_strided_slice %1 {offsets = [0, 2, 0], sizes = [8, 16, 384], strides = [1, 1, 1]} : vector<8x18x384xf32> to vector<8x16x384xf32>
    %16 = vector.shape_cast %15 : vector<8x16x384xf32> to vector<128x384xf32>
    %c2 = arith.constant 2 : index
    %c0_10 = arith.constant 0 : index
    %c0_11 = arith.constant 0 : index
    %17 = vector.load %arg3[%c2, %c0_10, %c0_11] : memref<3x384x128xf32, #tpu.memory_space<vmem>>, vector<1x384x128xf32>
    %18 = vector.shape_cast %17 : vector<1x384x128xf32> to vector<384x128xf32>
    %cst_12 = arith.constant dense<0.000000e+00> : vector<128x128xf32>
    %19 = tpu.matmul %16, %18, %cst_12 {dimension_numbers = #tpu.dot_dimension_numbers<[1], [0], [0], [1], [0, 0, 1, 1], [], []>} : vector<128x384xf32>, vector<384x128xf32>, vector<128x128xf32> -> vector<128x128xf32>
    %20 = arith.addf %14, %19 : vector<128x128xf32>
    %21 = vector.shape_cast %20 : vector<128x128xf32> to vector<8x16x128xf32>
    %22 = arith.truncf %21 : vector<8x16x128xf32> to vector<8x16x128xbf16>
    %c0_13 = arith.constant 0 : index
    %c0_14 = arith.constant 0 : index
    %c0_15 = arith.constant 0 : index
    %c0_16 = arith.constant 0 : index
    %23 = vector.load %arg4[%c0_13, %c0_14, %c0_15, %c0_16] : memref<1x8x16x128xbf16, #tpu.memory_space<vmem>>, vector<1x8x16x128xbf16>
    %24 = vector.shape_cast %23 : vector<1x8x16x128xbf16> to vector<8x16x128xbf16>
    %25 = vector.shape_cast %22 : vector<8x16x128xbf16> to vector<1x8x16x128xbf16>
    tpu.vector_store %arg4[%c0_13, %c0_14, %c0_15, %c0_16], %25 {strides = array<i32>} : memref<1x8x16x128xbf16, #tpu.memory_space<vmem>>, vector<1x8x16x128xbf16>,
    %cst_17 = arith.constant dense<0.000000e+00> : vector<128xf32>
    %26 = vector.multi_reduction <add>, %20, %cst_17 [0] : vector<128x128xf32> to vector<128xf32>
    %27 = vector.shape_cast %26 : vector<128xf32> to vector<1x128xf32>
    %28 = arith.mulf %20, %20 : vector<128x128xf32>
    %cst_18 = arith.constant dense<0.000000e+00> : vector<128xf32>
    %29 = vector.multi_reduction <add>, %28, %cst_18 [0] : vector<128x128xf32> to vector<128xf32>
    %30 = vector.shape_cast %29 : vector<128xf32> to vector<1x128xf32>
    %31 = tpu.concatenate %27, %30 in 0 : vector<1x128xf32>, vector<1x128xf32> -> vector<2x128xf32>
    %c0_19 = arith.constant 0 : index
    %c0_20 = arith.constant 0 : index
    %c0_21 = arith.constant 0 : index
    %c0_22 = arith.constant 0 : index
    %32 = vector.load %arg5[%c0_19, %c0_20, %c0_21, %c0_22] : memref<1x1x2x128xf32, #tpu.memory_space<vmem>>, vector<1x1x2x128xf32>
    %33 = vector.shape_cast %32 : vector<1x1x2x128xf32> to vector<2x128xf32>
    %34 = vector.shape_cast %31 : vector<2x128xf32> to vector<1x1x2x128xf32>
    tpu.vector_store %arg5[%c0_19, %c0_20, %c0_21, %c0_22], %34 {strides = array<i32>} : memref<1x1x2x128xf32, #tpu.memory_space<vmem>>, vector<1x1x2x128xf32>,
    return
  }
  func.func @transform_0(%arg0: i32, %arg1: i32) -> (i32, i32, i32, i32) {
    %c0_i32 = arith.constant 0 : i32
    %c0_i32_0 = arith.constant 0 : i32
    %c0_i32_1 = arith.constant 0 : i32
    return %arg0, %arg1, %c0_i32, %c0_i32_0 : i32, i32, i32, i32
  }
  func.func @transform_1(%arg0: i32, %arg1: i32) -> (i32, i32, i32) {
    %c0_i32 = arith.constant 0 : i32
    %c0_i32_0 = arith.constant 0 : i32
    %c0_i32_1 = arith.constant 0 : i32
    %c0_i32_2 = arith.constant 0 : i32
    return %c0_i32, %c0_i32_0, %c0_i32_1 : i32, i32, i32
  }
  func.func @transform_2(%arg0: i32, %arg1: i32) -> (i32, i32, i32, i32) {
    %c0_i32 = arith.constant 0 : i32
    %c0_i32_0 = arith.constant 0 : i32
    %c0_i32_1 = arith.constant 0 : i32
    return %arg0, %arg1, %c0_i32, %c0_i32_0 : i32, i32, i32, i32
  }
  func.func @transform_3(%arg0: i32, %arg1: i32) -> (i32, i32, i32, i32) {
    %c0_i32 = arith.constant 0 : i32
    %c0_i32_0 = arith.constant 0 : i32
    %c0_i32_1 = arith.constant 0 : i32
    return %arg0, %arg1, %c0_i32, %c0_i32_0 : i32, i32, i32, i32
  }
}

module attributes {stable_mosaic.version = 11 : i64} {
  func.func @bn_relu_kernel(%arg0: i32, %arg1: i32, %arg2: memref<1x8x16x128xbf16, #tpu.memory_space<vmem>>, %arg3: memref<1x128xf32, #tpu.memory_space<vmem>>, %arg4: memref<1x128xf32, #tpu.memory_space<vmem>>, %arg5: memref<1x8x16x128xf32, #tpu.memory_space<vmem>>) attributes {dimension_semantics = [#tpu.dimension_semantics<parallel>, #tpu.dimension_semantics<parallel>], iteration_bounds = array<i64: 2, 2>, scalar_prefetch = 0 : i64, scratch_operands = 0 : i64, tpu.core_type = #tpu.core_type<tc>, window_params = [{transform_indices = @transform_0, window_bounds = array<i64: 1, 8, 16, 128>}, {pipeline_mode = #tpu.pipeline_mode<synchronous>, transform_indices = @transform_1, window_bounds = array<i64: 1, 128>}, {pipeline_mode = #tpu.pipeline_mode<synchronous>, transform_indices = @transform_2, window_bounds = array<i64: 1, 128>}, {transform_indices = @transform_3, window_bounds = array<i64: 1, 8, 16, 128>}]} {
    %c0 = arith.constant 0 : index
    %c0_0 = arith.constant 0 : index
    %c0_1 = arith.constant 0 : index
    %c0_2 = arith.constant 0 : index
    %0 = vector.load %arg2[%c0, %c0_0, %c0_1, %c0_2] : memref<1x8x16x128xbf16, #tpu.memory_space<vmem>>, vector<1x8x16x128xbf16>
    %1 = vector.shape_cast %0 : vector<1x8x16x128xbf16> to vector<8x16x128xbf16>
    %2 = arith.extf %1 : vector<8x16x128xbf16> to vector<8x16x128xf32>
    %c0_3 = arith.constant 0 : index
    %c0_4 = arith.constant 0 : index
    %3 = vector.load %arg3[%c0_3, %c0_4] : memref<1x128xf32, #tpu.memory_space<vmem>>, vector<1x128xf32>
    %4 = vector.shape_cast %3 : vector<1x128xf32> to vector<1x1x128xf32>
    %5 = vector.broadcast %4 : vector<1x1x128xf32> to vector<8x16x128xf32>
    %6 = arith.mulf %2, %5 : vector<8x16x128xf32>
    %c0_5 = arith.constant 0 : index
    %c0_6 = arith.constant 0 : index
    %7 = vector.load %arg4[%c0_5, %c0_6] : memref<1x128xf32, #tpu.memory_space<vmem>>, vector<1x128xf32>
    %8 = vector.shape_cast %7 : vector<1x128xf32> to vector<1x1x128xf32>
    %9 = vector.broadcast %8 : vector<1x1x128xf32> to vector<8x16x128xf32>
    %10 = arith.addf %6, %9 : vector<8x16x128xf32>
    %cst = arith.constant 0.000000e+00 : f32
    %11 = vector.broadcast %cst : f32 to vector<8x16x128xf32>
    %12 = arith.maximumf %10, %11 : vector<8x16x128xf32>
    %c0_7 = arith.constant 0 : index
    %c0_8 = arith.constant 0 : index
    %c0_9 = arith.constant 0 : index
    %c0_10 = arith.constant 0 : index
    %13 = vector.load %arg5[%c0_7, %c0_8, %c0_9, %c0_10] : memref<1x8x16x128xf32, #tpu.memory_space<vmem>>, vector<1x8x16x128xf32>
    %14 = vector.shape_cast %13 : vector<1x8x16x128xf32> to vector<8x16x128xf32>
    %15 = vector.shape_cast %12 : vector<8x16x128xf32> to vector<1x8x16x128xf32>
    tpu.vector_store %arg5[%c0_7, %c0_8, %c0_9, %c0_10], %15 {strides = array<i32>} : memref<1x8x16x128xf32, #tpu.memory_space<vmem>>, vector<1x8x16x128xf32>,
    return
  }
  func.func @transform_0(%arg0: i32, %arg1: i32) -> (i32, i32, i32, i32) {
    %c0_i32 = arith.constant 0 : i32
    %c0_i32_0 = arith.constant 0 : i32
    %c0_i32_1 = arith.constant 0 : i32
    return %arg0, %arg1, %c0_i32, %c0_i32_0 : i32, i32, i32, i32
  }
  func.func @transform_1(%arg0: i32, %arg1: i32) -> (i32, i32) {
    %c0_i32 = arith.constant 0 : i32
    %c0_i32_0 = arith.constant 0 : i32
    %c0_i32_1 = arith.constant 0 : i32
    return %c0_i32, %c0_i32_0 : i32, i32
  }
  func.func @transform_2(%arg0: i32, %arg1: i32) -> (i32, i32) {
    %c0_i32 = arith.constant 0 : i32
    %c0_i32_0 = arith.constant 0 : i32
    %c0_i32_1 = arith.constant 0 : i32
    return %c0_i32, %c0_i32_0 : i32, i32
  }
  func.func @transform_3(%arg0: i32, %arg1: i32) -> (i32, i32, i32, i32) {
    %c0_i32 = arith.constant 0 : i32
    %c0_i32_0 = arith.constant 0 : i32
    %c0_i32_1 = arith.constant 0 : i32
    return %arg0, %arg1, %c0_i32, %c0_i32_0 : i32, i32, i32, i32
  }
}

</mosaic_0001>

<bundles_post_ra>
// kernel: vgg_block.3
= control target key start
LH: loop header
LB: loop body
LE: loop exit
PB: predicated region body
PF: predicated region fallthrough
CT: control target
= control target key end

     0   :  { %s574_s12 = smov 0   ;;  %s576_s13 = smov 0   ;;  %s699_s0 = inlined_call_operand.vmem [shape: bf16[2,16,16,128], index: 0, kind: input, shape index: {}]   ;;  %s700_s1 = inlined_call_operand.vmem [shape: f32[1,128], index: 1, kind: input, shape index: {}]   ;;  %s701_s2 = inlined_call_operand.vmem [shape: f32[1,128], index: 2, kind: input, shape index: {}]   ;;  %s702_s3 = inlined_call_operand.vmem [shape: f32[2,16,16,128], index: 3, kind: output, shape index: {}]  }
   0x1   :  { %s578_s14 = smov 0   ;;  %s580_s15 = smov 0  }
   0x2   :  { %s582_s16 = smov 0  }
   0x3 LB: > { %s22_s17 = sadd.s32 1, %s544_s14  ;;  %s25_s18 = sadd.s32 1, %s548_s15  ;;  %s552_s16 = sphi %s582_s16, %s13_s16   ;;  %s548_s15 = sphi %s580_s15, %s706_s15   ;;  %s544_s14 = sphi %s578_s14, %s705_s14   ;;  %s540_s13 = sphi %s576_s13, %s704_s13   ;;  %s536_s12 = sphi %s574_s12, %s703_s12  }
   0x4   : > { %p23_p0 = scmp.ge.s32.totalorder %s22_s17, 2  ;;  %p422_p1 = scmp.ge.s32.totalorder %s552_s16, 1 }
   0x5   : > { %p159_p2 = scmp.lt.s32.totalorder %s552_s16, 5 }
   0x6   : > { %s708_s17 = smov (%p23_p0, %s22_s17), 0  ;;  %s710_s18 = smov (!%p23_p0, %s25_s18), %s548_s15 }
   0x7   : > { %p160_p3 = pnand %p422_p1, %p159_p2  ;;  %p27_p4 = scmp.ge.s32.totalorder %s710_s18, 2 }
   0x8   : > { %s423_s19 = sshll.u32 (!%p160_p3), %s536_s12, 3  ;;  %p194_p5 = scmp.lt.s32.totalorder (!%p160_p3), %s540_s13, 1 }
   0x9   : > { %s712_s18 = smov (%p27_p4, %s710_s18), 0  ;;  %163 = sbr.rel (%p160_p3) target bundleno = 44 (0x2c), region = 32 }
   0xa   : > { %p196_p6 = scmp.lt.s32.totalorder (!%p160_p3), %s423_s19, 15 }
   0xe   : > { %s714_s13 = smov (!%p194_p5, %s540_s13), 1  ;;  %s716_s19 = smov (!%p196_p6, %s423_s19), 15  ;;  %v615_v0 = vld [vmem:[%s700_s1] ss:$0 sm:$0xff] }
   0xf   : > { %s425_s20 = sshll.u32 %s714_s13, 5  ;;  %s424_s21 = sshll.u32 %s716_s19, 1  ;;  %v623_v5 = vld [vmem:[%s701_s2] ss:$0 sm:$0xff] }
  0x10   : > { %s604_s22 = sadd.s32 %s425_s20, %s424_s21 }
  0x11   : > { %s426_s23 = sshll.u32 %s604_s22, 2  ;;  %s430_s4 = sshll.u32 %s604_s22, 3 }
  0x12   : > { %s610_s26 = scalar_lea.vmem %s699_s0, %s426_s23  ;;  %s642_s7 = scalar_lea.vmem %s702_s3, %s430_s4 }
  0x13   : > { %v434_v1 = vld [vmem:[%s610_s26] sm:$0xff]   ;;  %v465_v2 = vld [vmem:[%s610_s26 + $0x8] sm:$0xff]   ;;  %v466_v3 = vld [vmem:[%s610_s26 + $0x10] sm:$0xff]  }
  0x14   : > { %v435_v4 = vunpack.c.l.bf16 %v434_v1  ;;  %v436_v6 = vunpack.c.h.bf16 %v434_v1  ;;  %v439_v7 = vunpack.c.l.bf16 %v465_v2  ;;  %v440_v8 = vunpack.c.h.bf16 %v465_v2  ;;  %v467_v9 = vld [vmem:[%s610_s26 + $0x18] sm:$0xff]   ;;  %v468_v30 = vld [vmem:[%s610_s26 + $0x20] sm:$0xff]   ;;  %v469_v31 = vld [vmem:[%s610_s26 + $0x28] sm:$0xff]  }
  0x15   : > { %v443_v10 = vunpack.c.l.bf16 %v466_v3  ;;  %v444_v11 = vunpack.c.h.bf16 %v466_v3  ;;  %v447_v12 = vunpack.c.l.bf16 %v467_v9  ;;  %v448_v13 = vunpack.c.h.bf16 %v467_v9  ;;  %v470_v36 = vld [vmem:[%s610_s26 + $0x30] sm:$0xff]   ;;  %v471_v37 = vld [vmem:[%s610_s26 + $0x38] sm:$0xff]  }
  0x16   : > { %v251_v14 = vmul.f32 %v615_v0, %v435_v4  ;;  %v252_v15 = vmul.f32 %v615_v0, %v436_v6  ;;  %v253_v16 = vmul.f32 %v615_v0, %v439_v7  ;;  %v254_v17 = vmul.f32 %v615_v0, %v440_v8 }
  0x17   : > { %v255_v18 = vmul.f32 %v615_v0, %v443_v10  ;;  %v256_v19 = vmul.f32 %v615_v0, %v444_v11  ;;  %v257_v20 = vmul.f32 %v615_v0, %v447_v12  ;;  %v258_v21 = vmul.f32 %v615_v0, %v448_v13 }
  0x18   : > { %v271_v22 = vadd.f32 %v623_v5, %v251_v14  ;;  %v272_v23 = vadd.f32 %v623_v5, %v252_v15  ;;  %v273_v24 = vadd.f32 %v623_v5, %v253_v16  ;;  %v274_v25 = vadd.f32 %v623_v5, %v254_v17 }
  0x19   : > { %v275_v26 = vadd.f32 %v623_v5, %v255_v18  ;;  %v276_v27 = vadd.f32 %v623_v5, %v256_v19  ;;  %v277_v28 = vadd.f32 %v623_v5, %v257_v20  ;;  %v278_v29 = vadd.f32 %v623_v5, %v258_v21 }
  0x1a   : > { %v287_v32 = vmax.f32 %v271_v22, 0.0  ;;  %v288_v33 = vmax.f32 %v272_v23, 0.0  ;;  %v289_v34 = vmax.f32 %v273_v24, 0.0  ;;  %v290_v35 = vmax.f32 %v274_v25, 0.0 }
  0x1b   : > { %v291_v38 = vmax.f32 %v275_v26, 0.0  ;;  %v292_v39 = vmax.f32 %v276_v27, 0.0  ;;  %v293_v40 = vmax.f32 %v277_v28, 0.0  ;;  %v294_v41 = vmax.f32 %v278_v29, 0.0 }
  0x1c   : > { %303 = vst [vmem:[%s642_s7] sm:$0xff] %v287_v32  ;;  %v451_v42 = vunpack.c.l.bf16 %v468_v30  ;;  %v452_v43 = vunpack.c.h.bf16 %v468_v30  ;;  %v455_v44 = vunpack.c.l.bf16 %v469_v31  ;;  %v456_v45 = vunpack.c.h.bf16 %v469_v31 }
  0x1d   : > { %304 = vst [vmem:[%s642_s7 + $0x8] sm:$0xff] %v288_v33  ;;  %v459_v46 = vunpack.c.l.bf16 %v470_v36  ;;  %v460_v47 = vunpack.c.h.bf16 %v470_v36  ;;  %v463_v48 = vunpack.c.l.bf16 %v471_v37  ;;  %v464_v49 = vunpack.c.h.bf16 %v471_v37 }
  0x1e   : > { %305 = vst [vmem:[%s642_s7 + $0x10] sm:$0xff] %v289_v34  ;;  %v259_v50 = vmul.f32 %v615_v0, %v451_v42  ;;  %v260_v51 = vmul.f32 %v615_v0, %v452_v43  ;;  %v261_v52 = vmul.f32 %v615_v0, %v455_v44  ;;  %v262_v53 = vmul.f32 %v615_v0, %v456_v45 }
  0x1f   : > { %306 = vst [vmem:[%s642_s7 + $0x18] sm:$0xff] %v290_v35  ;;  %v263_v54 = vmul.f32 %v615_v0, %v459_v46  ;;  %v264_v55 = vmul.f32 %v615_v0, %v460_v47  ;;  %v265_v56 = vmul.f32 %v615_v0, %v463_v48  ;;  %v266_v57 = vmul.f32 %v615_v0, %v464_v49 }
  0x20   : > { %307 = vst [vmem:[%s642_s7 + $0x20] sm:$0xff] %v291_v38  ;;  %v279_v58 = vadd.f32 %v623_v5, %v259_v50  ;;  %v280_v59 = vadd.f32 %v623_v5, %v260_v51  ;;  %v281_v60 = vadd.f32 %v623_v5, %v261_v52  ;;  %v282_v61 = vadd.f32 %v623_v5, %v262_v53 }
  0x21   : > { %308 = vst [vmem:[%s642_s7 + $0x28] sm:$0xff] %v292_v39  ;;  %v283_v62 = vadd.f32 %v623_v5, %v263_v54  ;;  %v284_v63 = vadd.f32 %v623_v5, %v264_v55  ;;  %v285_v3 = vadd.f32 %v623_v5, %v265_v56  ;;  %v286_v6 = vadd.f32 %v623_v5, %v266_v57 }
  0x22   : > { %309 = vst [vmem:[%s642_s7 + $0x30] sm:$0xff] %v293_v40  ;;  %v295_v0 = vmax.f32 %v279_v58, 0.0  ;;  %v296_v1 = vmax.f32 %v280_v59, 0.0  ;;  %v297_v2 = vmax.f32 %v281_v60, 0.0  ;;  %v298_v4 = vmax.f32 %v282_v61, 0.0 }
  0x23   : > { %310 = vst [vmem:[%s642_s7 + $0x38] sm:$0xff] %v294_v41  ;;  %v299_v7 = vmax.f32 %v283_v62, 0.0  ;;  %v300_v8 = vmax.f32 %v284_v63, 0.0  ;;  %v301_v9 = vmax.f32 %v285_v3, 0.0  ;;  %v302_v10 = vmax.f32 %v286_v6, 0.0 }
  0x24   : > { %311 = vst [vmem:[%s642_s7 + $0x40] sm:$0xff] %v295_v0 }
  0x25   : > { %312 = vst [vmem:[%s642_s7 + $0x48] sm:$0xff] %v296_v1 }
  0x26   : > { %313 = vst [vmem:[%s642_s7 + $0x50] sm:$0xff] %v297_v2 }
  0x27   : > { %314 = vst [vmem:[%s642_s7 + $0x58] sm:$0xff] %v298_v4 }
  0x28   : > { %315 = vst [vmem:[%s642_s7 + $0x60] sm:$0xff] %v299_v7 }
  0x29   : > { %316 = vst [vmem:[%s642_s7 + $0x68] sm:$0xff] %v300_v8 }
  0x2a   : > { %317 = vst [vmem:[%s642_s7 + $0x70] sm:$0xff] %v301_v9 }
  0x2b   : > { %318 = vst [vmem:[%s642_s7 + $0x78] sm:$0xff] %v302_v10 }
  0x2c PF: > { %s13_s16 = sadd.s32 1, %s552_s16   ;;  %s703_s12 = smov %s544_s14 }
  0x2d   : > { %p10_p7 = scmp.ge.s32.totalorder %s13_s16, 6   ;;  %s704_s13 = smov %s548_s15 }
  0x2e   : > { %s705_s14 = smov %s708_s17  ;;  %s706_s15 = smov %s712_s18 }
  0x2f   :  { %12 = sbr.rel (!%p10_p7) target bundleno = 3 (0x3), region = 62 }

// kernel: vgg_block.2
= control target key start
LH: loop header
LB: loop body
LE: loop exit
PB: predicated region body
PF: predicated region fallthrough
CT: control target
= control target key end

     0   :  { %s2032_s12 = smov 0   ;;  %s2034_s13 = smov 0   ;;  %s3181_s0 = inlined_call_operand.vmem [shape: f32[2,16,18,384], index: 0, kind: input, shape index: {}]   ;;  %s3182_s1 = inlined_call_operand.vmem [shape: f32[3,384,128], index: 1, kind: input, shape index: {}]   ;;  %s3183_s2 = inlined_call_operand.vmem [shape: bf16[2,16,16,128], index: 2, kind: output, shape index: {0}]   ;;  %s3184_s3 = inlined_call_operand.vmem [shape: f32[2,2,2,128], index: 3, kind: output, shape index: {1}]  }
   0x1   :  { %s2036_s14 = smov 0   ;;  %s2038_s15 = smov 0  }
   0x2   :  { %s2040_s16 = smov 0  }
   0x3 LB: > { %s23_s17 = sadd.s32 1, %s2002_s14  ;;  %s26_s18 = sadd.s32 1, %s2006_s15  ;;  %s2010_s16 = sphi %s2040_s16, %s14_s16   ;;  %s2006_s15 = sphi %s2038_s15, %s3249_s15   ;;  %s2002_s14 = sphi %s2036_s14, %s3248_s14   ;;  %s1998_s13 = sphi %s2034_s13, %s3247_s13   ;;  %s1994_s12 = sphi %s2032_s12, %s3246_s12  }
   0x4   : > { %p24_p0 = scmp.ge.s32.totalorder %s23_s17, 2  ;;  %p1708_p1 = scmp.ge.s32.totalorder %s2010_s16, 1 }
   0x5   : > { %p164_p2 = scmp.lt.s32.totalorder %s2010_s16, 5 }
   0x6   : > { %s3251_s17 = smov (%p24_p0, %s23_s17), 0  ;;  %s3253_s18 = smov (!%p24_p0, %s26_s18), %s2006_s15 }
   0x7   : > { %p165_p3 = pnand %p1708_p1, %p164_p2  ;;  %p28_p4 = scmp.ge.s32.totalorder %s3253_s18, 2 }
   0x9   : > { %s3255_s18 = smov (%p28_p4, %s3253_s18), 0  ;;  %168 = sbr.rel (%p165_p3) target bundleno = 490 (0x1ea), region = 28 }
   0xe   : > { %v1732_v0 = vld [vmem:[%s3182_s1 + $0x1f8] sm:$0xff]  ;;  %v1731_v1 = vld [vmem:[%s3182_s1 + $0x1f0] sm:$0xff]  ;;  %s1709_s23 = sshll.u32 %s1994_s12, 3  ;;  %p207_p5 = scmp.lt.s32.totalorder %s1998_s13, 1  ;;  %v1730_v2 = vld [vmem:[%s3182_s1 + $0x1e8] sm:$0xff]  ;;  %vm428_vm0 = vcmask 1046528  }
   0xf   : > { %1862 = vmatpush.msra.mxu1 %v1732_v0  ;;  %1863 = vmatpush.msra.mxu2 %v1732_v0  ;;  %p209_p6 = scmp.lt.s32.totalorder %s1709_s23, 15  ;;  %v1729_v3 = vld [vmem:[%s3182_s1 + $0x1e0] sm:$0xff]  ;;  %v1728_v4 = vld [vmem:[%s3182_s1 + $0x1d8] sm:$0xff]  ;;  %v1727_v5 = vld [vmem:[%s3182_s1 + $0x1d0] sm:$0xff]  ;;  %vm1036_vm1 = vcmask 1045504   ;;  %p230_p7 = scmp.lt.s32.totalorder %s1994_s12, 1 }
  0x10   : > { %1864 = vmatpush.msra.mxu3 %v1732_v0  ;;  %646 = vmatpush.msra.mxu0 %v1732_v0  ;;  %s3257_s13 = smov (!%p207_p5, %s1998_s13), 1  ;;  %v1726_v6 = vld [vmem:[%s3182_s1 + $0x1c8] sm:$0xff]  ;;  %v1725_v7 = vld [vmem:[%s3182_s1 + $0x1c0] sm:$0xff]  ;;  %v1724_v8 = vld [vmem:[%s3182_s1 + $0x1b8] sm:$0xff]  ;;  %vm1555_vm2 = vcmask 1040384  }
  0x11   : > { %1865 = vmatpush.msra.mxu1 %v1731_v1  ;;  %1866 = vmatpush.msra.mxu2 %v1731_v1  ;;  %s3259_s23 = smov (!%p209_p6, %s1709_s23), 15  ;;  %s1911_s5 = smul.u32 144, %s3257_s13  ;;  %v1723_v9 = vld [vmem:[%s3182_s1 + $0x1b0] sm:$0xff]  ;;  %v1722_v10 = vld [vmem:[%s3182_s1 + $0x1a8] sm:$0xff]  ;;  %v1721_v11 = vld [vmem:[%s3182_s1 + $0x1a0] sm:$0xff] }
  0x12   : > { %1867 = vmatpush.msra.mxu3 %v1731_v1  ;;  %647 = vmatpush.msra.mxu0 %v1731_v1  ;;  %s1910_s6 = smul.u32 9, %s3259_s23  ;;  %v1720_v12 = vld [vmem:[%s3182_s1 + $0x198] sm:$0xff]  ;;  %v1719_v19 = vld [vmem:[%s3182_s1 + $0x190] sm:$0xff]  ;;  %v1718_v22 = vld [vmem:[%s3182_s1 + $0x188] sm:$0xff]  ;;  %s1713_s25 = sshll.u32 %s3257_s13, 5 }
  0x13   : > { %1868 = vmatpush.msra.mxu1 %v1730_v2  ;;  %1869 = vmatpush.msra.mxu2 %v1730_v2  ;;  %v1717_v29 = vld [vmem:[%s3182_s1 + $0x180] sm:$0xff]  ;;  %v1764_v35 = vld [vmem:[%s3182_s1 + $0x2f8] sm:$0xff]  ;;  %v1763_v41 = vld [vmem:[%s3182_s1 + $0x2f0] sm:$0xff]  ;;  %s3261_s12 = smov (!%p230_p7, %s1994_s12), 1  ;;  %s1715_s4 = sshll.u32 %s3257_s13, 1 }
  0x14   : > { %1870 = vmatpush.msra.mxu3 %v1730_v2  ;;  %648 = vmatpush.msra.mxu0 %v1730_v2  ;;  %s213_s11 = sadd.s32 %s1911_s5, %s1910_s6  ;;  %v323_v36 = vld [vmem:[%s3182_s1 + $0x78] sm:$0xff]  ;;  %v322_v42 = vld [vmem:[%s3182_s1 + $0x70] sm:$0xff]  ;;  %v1762_v46 = vld [vmem:[%s3182_s1 + $0x2e8] sm:$0xff]  ;;  %s233_s5 = sadd.s32 %s1715_s4, %s3261_s12 }
  0x15   : > { %1871 = vmatpush.msra.mxu1 %v1729_v3  ;;  %1872 = vmatpush.msra.mxu2 %v1729_v3  ;;  %s1710_s24 = sshll.u32 %s213_s11, 3  ;;  %v1748_v38 = vld [vmem:[%s3182_s1 + $0x278] sm:$0xff]  ;;  %v1747_v43 = vld [vmem:[%s3182_s1 + $0x270] sm:$0xff]  ;;  %v321_v47 = vld [vmem:[%s3182_s1 + $0x68] sm:$0xff]  ;;  %s1716_s6 = sshll.u32 %s233_s5, 1 }
  0x16   : > { %1873 = vmatpush.msra.mxu3 %v1729_v3  ;;  %649 = vmatpush.msra.mxu0 %v1729_v3  ;;  %s2111_s29 = scalar_lea.vmem %s3181_s0, %s1710_s24  ;;  %v1746_v50 = vld [vmem:[%s3182_s1 + $0x268] sm:$0xff]  ;;  %v339_v51 = vld [vmem:[%s3182_s1 + $0xf8] sm:$0xff]  ;;  %v1761_v52 = vld [vmem:[%s3182_s1 + $0x2e0] sm:$0xff]  ;;  %s235_s9 = scalar_lea.vmem %s3184_s3, %s1716_s6 }
  0x17   : > { %1874 = vmatpush.msra.mxu1 %v1728_v4  ;;  %1875 = vmatpush.msra.mxu2 %v1728_v4  ;;  %v2120_v13 = vld [vmem:[%s2111_s29 + $0x90] sm:$0xff]  ;;  %v2123_v14 = vld [vmem:[%s2111_s29 + $0xa8] sm:$0xff]  ;;  %v2126_v15 = vld [vmem:[%s2111_s29 + $0x120] sm:$0xff] }
  0x18   : > { %1876 = vmatpush.msra.mxu3 %v1728_v4  ;;  %650 = vmatpush.msra.mxu0 %v1728_v4  ;;  %v2129_v16 = vld [vmem:[%s2111_s29 + $0x138] sm:$0xff]  ;;  %v290_v17 = vld [vmem:[%s2111_s29 + $0x1b0] sm:$0xff]  ;;  %v2133_v18 = vld [vmem:[%s2111_s29 + $0x1c8] sm:$0xff]  ;;  %v459_v20 = vrot.slane %v2120_v13, 1  ;;  %v460_v21 = vrot.slane %v2123_v14, 1  ;;  %v489_v23 = vrot.slane %v2126_v15, 1 }
  0x19   : > { %1877 = vmatpush.msra.mxu1 %v1727_v5  ;;  %1878 = vmatpush.msra.mxu2 %v1727_v5  ;;  %v490_v24 = vrot.slane %v2129_v16, 1  ;;  %v519_v25 = vrot.slane %v290_v17, 1  ;;  %v520_v26 = vrot.slane %v2133_v18, 1  ;;  %v2147_v27 = vld [vmem:[%s2111_s29] sm:$0xff]  ;;  %v2150_v28 = vld [vmem:[%s2111_s29 + $0x18] sm:$0xff]  ;;  %v1759_v61 = vld [vmem:[%s3182_s1 + $0x2d0] sm:$0xff] }
  0x1a   : > { %1879 = vmatpush.msra.mxu3 %v1727_v5  ;;  %651 = vmatpush.msra.mxu0 %v1727_v5  ;;  %v461_v30 = vsel %vm428_vm0, %v459_v20, %v460_v21  ;;  %v429_v33 = vrot.slane %v2147_v27, 1  ;;  %v430_v34 = vrot.slane %v2150_v28, 1  ;;  %v278_v37 = vld [vmem:[%s2111_s29 + $0x150] sm:$0x3]  ;;  %v260_v39 = vld [vmem:[%s2111_s29 + $0xc0] sm:$0x3] }
  0x1b   : > { %1880 = vmatpush.msra.mxu1 %v1726_v6  ;;  %1881 = vmatpush.msra.mxu2 %v1726_v6  ;;  %v491_v31 = vsel %vm428_vm0, %v489_v23, %v490_v24  ;;  %v521_v32 = vsel %vm428_vm0, %v519_v25, %v520_v26  ;;  %v296_v40 = vld [vmem:[%s2111_s29 + $0x1e0] sm:$0x3]  ;;  %v498_v45 = vrot.slane %v278_v37, 1  ;;  %v468_v48 = vrot.slane %v260_v39, 1  ;;  %v1760_v58 = vld [vmem:[%s3182_s1 + $0x2d8] sm:$0xff]  ;;  %v338_v62 = vld [vmem:[%s3182_s1 + $0xf0] sm:$0xff] }
  0x1c   : > { %1882 = vmatpush.msra.mxu3 %v1726_v6  ;;  %652 = vmatpush.msra.mxu0 %v1726_v6  ;;  %v431_v44 = vsel %vm428_vm0, %v429_v33, %v430_v34  ;;  %v528_v49 = vrot.slane %v296_v40, 1  ;;  %v320_v53 = vld [vmem:[%s3182_s1 + $0x60] sm:$0xff]  ;;  %v319_v59 = vld [vmem:[%s3182_s1 + $0x58] sm:$0xff]  ;;  %v2228_v63 = vld [vmem:[%s2111_s29 + $0x30] sm:$0x3] }
  0x1d   : > { %1883 = vmatpush.msra.mxu1 %v1725_v7  ;;  %1884 = vmatpush.msra.mxu2 %v1725_v7  ;;  %v1745_v54 = vld [vmem:[%s3182_s1 + $0x260] sm:$0xff]  ;;  %v499_v55 = vsel %vm428_vm0, %v490_v24, %v498_v45  ;;  %v469_v56 = vsel %vm428_vm0, %v460_v21, %v468_v48  ;;  %v1744_v60 = vld [vmem:[%s3182_s1 + $0x258] sm:$0xff]  ;;  %v2234_v1 = vld [vmem:[%s2111_s29 + $0xf0] sm:$0xff] }
  0x1e   : > { %1885 = vmatpush.msra.mxu3 %v1725_v7  ;;  %653 = vmatpush.msra.mxu0 %v1725_v7  ;;  %v529_v57 = vsel %vm428_vm0, %v520_v26, %v528_v49  ;;  %v2231_v0 = vld [vmem:[%s2111_s29 + $0xd8] sm:$0xff]  ;;  %v2237_v2 = vld [vmem:[%s2111_s29 + $0x168] sm:$0xff]  ;;  %v2240_v3 = vld [vmem:[%s2111_s29 + $0x180] sm:$0xff]  ;;  %v475_v17 = vrot.slane %v2234_v1, 1 }
  0x1f   : > { %1886 = vmatpush.msra.mxu1 %v1724_v8  ;;  %1887 = vmatpush.msra.mxu2 %v1724_v8  ;;  %v318_v4 = vld [vmem:[%s3182_s1 + $0x50] sm:$0xff]  ;;  %v2246_v5 = vld [vmem:[%s2111_s29 + $0x1f8] sm:$0xff]  ;;  %v504_v18 = vrot.slane %v2237_v2, 1  ;;  %v1742_v20 = vld [vmem:[%s3182_s1 + $0x248] sm:$0xff] }
  0x20   : > { %1888 = vmatpush.msra.mxu3 %v1724_v8  ;;  %654 = vmatpush.msra.mxu0 %v1724_v8  ;;  %v2249_v6 = vld [vmem:[%s2111_s29 + $0x210] sm:$0xff]  ;;  %v337_v8 = vld [vmem:[%s3182_s1 + $0xe8] sm:$0xff]  ;;  %v336_v21 = vld [vmem:[%s3182_s1 + $0xe0] sm:$0xff] }
  0x21   : > { %1889 = vmatpush.msra.mxu1 %v1723_v9  ;;  %1890 = vmatpush.msra.mxu2 %v1723_v9  ;;  %v1743_v7 = vld [vmem:[%s3182_s1 + $0x250] sm:$0xff]  ;;  %v535_v23 = vrot.slane %v2249_v6, 1  ;;  %v1757_v24 = vld [vmem:[%s3182_s1 + $0x2c0] sm:$0xff]  ;;  %v1756_v33 = vld [vmem:[%s3182_s1 + $0x2b8] sm:$0xff] }
  0x22   : > { %1891 = vmatpush.msra.mxu3 %v1723_v9  ;;  %655 = vmatpush.msra.mxu0 %v1723_v9  ;;  %v438_v9 = vrot.slane %v2228_v63, 1  ;;  %v316_v25 = vld [vmem:[%s3182_s1 + $0x40] sm:$0xff]  ;;  %v2310_v37 = vld [vmem:[%s2111_s29 + $0x48] sm:$0xff]  ;;  %v1755_v39 = vld [vmem:[%s3182_s1 + $0x2b0] sm:$0xff] }
  0x23   : > { %1892 = vmatpush.msra.mxu1 %v1722_v10  ;;  %1893 = vmatpush.msra.mxu2 %v1722_v10  ;;  %v1741_v26 = vld [vmem:[%s3182_s1 + $0x240] sm:$0xff]  ;;  %v269_v40 = vld [vmem:[%s2111_s29 + $0x108] sm:$0x3]  ;;  %v1739_v45 = vld [vmem:[%s3182_s1 + $0x230] sm:$0xff] }
  0x24   : > { %1894 = vmatpush.msra.mxu3 %v1722_v10  ;;  %656 = vmatpush.msra.mxu0 %v1722_v10  ;;  %v1758_v10 = vld [vmem:[%s3182_s1 + $0x2c8] sm:$0xff] }
  0x25   : > { %1895 = vmatpush.msra.mxu1 %v1721_v11  ;;  %1896 = vmatpush.msra.mxu2 %v1721_v11  ;;  %v313_v49 = vld [vmem:[%s3182_s1 + $0x28] sm:$0xff] }
  0x26   : > { %1897 = vmatpush.msra.mxu3 %v1721_v11  ;;  %657 = vmatpush.msra.mxu0 %v1721_v11  ;;  %v317_v11 = vld [vmem:[%s3182_s1 + $0x48] sm:$0xff] }
  0x27   : > { %1898 = vmatpush.msra.mxu1 %v1720_v12  ;;  %1899 = vmatpush.msra.mxu2 %v1720_v12 }
  0x28   : > { %1900 = vmatpush.msra.mxu3 %v1720_v12  ;;  %658 = vmatpush.msra.mxu0 %v1720_v12  ;;  %v474_v12 = vrot.slane %v2231_v0, 1 }
  0x29   : > { %1901 = vmatpush.msra.mxu1 %v1719_v19  ;;  %1902 = vmatpush.msra.mxu2 %v1719_v19 }
  0x2a   : > { %1903 = vmatpush.msra.mxu3 %v1719_v19  ;;  %659 = vmatpush.msra.mxu0 %v1719_v19  ;;  %v505_v19 = vrot.slane %v2240_v3, 1 }
  0x2b   : > { %1904 = vmatpush.msra.mxu1 %v1718_v22  ;;  %1905 = vmatpush.msra.mxu2 %v1718_v22 }
  0x2c   : > { %1906 = vmatpush.msra.mxu3 %v1718_v22  ;;  %660 = vmatpush.msra.mxu0 %v1718_v22  ;;  %v534_v22 = vrot.slane %v2246_v5, 1 }
  0x2d   : > { %1907 = vmatpush.msra.mxu1 %v1717_v29  ;;  %1908 = vmatpush.msra.mxu2 %v1717_v29 }
  0x2e   : > { %1909 = vmatpush.msra.mxu3 %v1717_v29  ;;  %674 = vmatmul.f32.vlgmr.msra.gmra.mxu1 %v461_v30  ;;  %v476_v30 = vsel %vm428_vm0, %v474_v12, %v475_v17  ;;  %v2387_v12 = vld [vmem:[%s2111_s29 + $0x8] sm:$0xff] }
  0x2f   : > { %686 = vmatmul.f32.vlgmr.msra.gmra.mxu2 %v491_v31  ;;  %698 = vmatmul.f32.vlgmr.msra.gmra.mxu3 %v521_v32  ;;  %v506_v31 = vsel %vm428_vm0, %v504_v18, %v505_v19  ;;  %v536_v32 = vsel %vm428_vm0, %v534_v22, %v535_v23  ;;  %v2393_v18 = vld [vmem:[%s2111_s29 + $0x10] sm:$0xff] }
  0x30   : > { %776 = vmatpush.msrb.mxu2 %v1764_v35  ;;  %841 = vmatpush.msrb.mxu3 %v323_v36  ;;  %v335_v35 = vld [vmem:[%s3182_s1 + $0xd8] sm:$0xff]  ;;  %v1735_v22 = vld [vmem:[%s3182_s1 + $0x210] sm:$0xff] }
  0x31   : > { %711 = vmatpush.msrb.mxu1 %v1748_v38  ;;  %661 = vmatpush.msra.mxu0 %v1717_v29  ;;  %v439_v29 = vsel %vm428_vm0, %v430_v34, %v438_v9  ;;  %v315_v34 = vld [vmem:[%s3182_s1 + $0x38] sm:$0xff]  ;;  %v2313_v38 = vld [vmem:[%s2111_s29 + $0x60] sm:$0xff] }
  0x32   : > { %777 = vmatpush.msrb.mxu2 %v1763_v41  ;;  %842 = vmatpush.msrb.mxu3 %v322_v42  ;;  %v1740_v36 = vld [vmem:[%s3182_s1 + $0x238] sm:$0xff]  ;;  %v314_v42 = vld [vmem:[%s3182_s1 + $0x30] sm:$0xff]  ;;  %v445_v48 = vrot.slane %v2313_v38, 1 }
  0x33   : > { %712 = vmatpush.msrb.mxu1 %v1747_v43  ;;  %662 = vmatmul.f32.vlgmr.msra.gmra.mxu0 %v431_v44  ;;  %v287_v41 = vld [vmem:[%s2111_s29 + $0x198] sm:$0x3]  ;;  %v334_v43 = vld [vmem:[%s3182_s1 + $0xd0] sm:$0xff]  ;;  %v305_v44 = vld [vmem:[%s2111_s29 + $0x228] sm:$0x3] }
  0x34   : > { %778 = vmatpush.msrb.mxu2 %v1762_v46  ;;  %843 = vmatpush.msrb.mxu3 %v321_v47  ;;  %v1754_v46 = vld [vmem:[%s3182_s1 + $0x2a8] sm:$0xff]  ;;  %v444_v47 = vrot.slane %v2310_v37, 1  ;;  %v1736_v9 = vld [vmem:[%s3182_s1 + $0x218] sm:$0xff] }
  0x35   : > { %713 = vmatpush.msrb.mxu1 %v1746_v50  ;;  %906 = vmatpush.msrb.mxu0 %v339_v51  ;;  %v333_v50 = vld [vmem:[%s3182_s1 + $0xc8] sm:$0xff]  ;;  %v483_v51 = vrot.slane %v269_v40, 1 }
  0x36   : > { %779 = vmatpush.msrb.mxu2 %v1761_v52  ;;  %844 = vmatpush.msrb.mxu3 %v320_v53  ;;  %v513_v52 = vrot.slane %v287_v41, 1  ;;  %v1738_v53 = vld [vmem:[%s3182_s1 + $0x228] sm:$0xff] }
  0x37   : > { %714 = vmatpush.msrb.mxu1 %v1745_v54  ;;  %689 = vmatmul.f32.gmra.mxu2 %v499_v55  ;;  %v1753_v54 = vld [vmem:[%s3182_s1 + $0x2a0] sm:$0xff]  ;;  %v543_v55 = vrot.slane %v305_v44, 1  ;;  %v2445_v44 = vld [vmem:[%s2111_s29 + $0x38] sm:$0x3] }
  0x38   : > { %677 = vmatmul.f32.gmra.mxu1 %v469_v56  ;;  %701 = vmatmul.f32.gmra.mxu3 %v529_v57  ;;  %v312_v56 = vld [vmem:[%s3182_s1 + $0x20] sm:$0xff] }
  0x39   : > { %780 = vmatpush.msrb.mxu2 %v1760_v58  ;;  %845 = vmatpush.msrb.mxu3 %v319_v59  ;;  %v332_v57 = vld [vmem:[%s3182_s1 + $0xc0] sm:$0xff]  ;;  %v446_v59 = vsel %vm428_vm0, %v444_v47, %v445_v48  ;;  %v1796_v47 = vld [vmem:[%s3182_s1 + $0x3f8] sm:$0xff] }
  0x3a   : > { %715 = vmatpush.msrb.mxu1 %v1744_v60  ;;  %907 = vmatpush.msrb.mxu0 %v338_v62  ;;  %v1737_v58 = vld [vmem:[%s3182_s1 + $0x220] sm:$0xff]  ;;  %v484_v60 = vsel %vm428_vm0, %v475_v17, %v483_v51  ;;  %v1752_v62 = vld [vmem:[%s3182_s1 + $0x298] sm:$0xff] }
  0x3b   : > { %781 = vmatpush.msrb.mxu2 %v1759_v61  ;;  %846 = vmatpush.msrb.mxu3 %v318_v4  ;;  %v514_v61 = vsel %vm428_vm0, %v505_v19, %v513_v52  ;;  %v544_v4 = vsel %vm428_vm0, %v535_v23, %v543_v55  ;;  %v2390_v17 = vld [vmem:[%s2111_s29 + $0x20] sm:$0xff]  ;;  %v2396_v19 = vld [vmem:[%s2111_s29 + $0x28] sm:$0xff]  ;;  %v1779_v52 = vld [vmem:[%s3182_s1 + $0x370] sm:$0xff] }
  0x3c   : > { %716 = vmatpush.msrb.mxu1 %v1743_v7  ;;  %908 = vmatpush.msrb.mxu0 %v337_v8  ;;  %v311_v7 = vld [vmem:[%s3182_s1 + $0x18] sm:$0xff]  ;;  %v1750_v23 = vld [vmem:[%s3182_s1 + $0x288] sm:$0xff] }
  0x3d   : > { %782 = vmatpush.msrb.mxu2 %v1758_v10  ;;  %847 = vmatpush.msrb.mxu3 %v317_v11  ;;  %v331_v8 = vld [vmem:[%s3182_s1 + $0xb8] sm:$0xff]  ;;  %v1751_v10 = vld [vmem:[%s3182_s1 + $0x290] sm:$0xff]  ;;  %v1778_v55 = vld [vmem:[%s3182_s1 + $0x368] sm:$0xff] }
  0x3e   : > { %717 = vmatpush.msrb.mxu1 %v1742_v20  ;;  %909 = vmatpush.msrb.mxu0 %v336_v21  ;;  %v2384_v11 = vld [vmem:[%s2111_s29 + $0x78] sm:$0x3]  ;;  %v310_v20 = vld [vmem:[%s3182_s1 + $0x10] sm:$0xff] }
  0x3f   : > { %783 = vmatpush.msrb.mxu2 %v1757_v24  ;;  %848 = vmatpush.msrb.mxu3 %v316_v25  ;;  %v330_v21 = vld [vmem:[%s3182_s1 + $0xb0] sm:$0xff]  ;;  %v453_v24 = vrot.slane %v2384_v11, 1  ;;  %v309_v25 = vld [vmem:[%s3182_s1 + $0x8] sm:$0xff] }
  0x40   : > { %718 = vmatpush.msrb.mxu1 %v1741_v26  ;;  %665 = vmatmul.f32.gmra.mxu0 %v439_v29  ;;  %v329_v26 = vld [vmem:[%s3182_s1 + $0xa8] sm:$0xff]  ;;  %v432_v29 = vrot.slane %v2387_v12, 1 }
  0x41   : > { %680 = vmatmul.f32.gmra.mxu1 %v476_v30  ;;  %692 = vmatmul.f32.gmra.mxu2 %v506_v31  ;;  %v433_v30 = vrot.slane %v2390_v17, 1  ;;  %v435_v31 = vrot.slane %v2393_v18, 1  ;;  %v454_v40 = vsel %vm428_vm0, %v445_v48, %v453_v24  ;;  %v326_v48 = vld [vmem:[%s3182_s1 + $0x90] sm:$0xff] }
  0x42   : > { %704 = vmatmul.f32.gmra.mxu3 %v536_v32  ;;  %784 = vmatpush.msrb.mxu2 %v1756_v33  ;;  %v436_v32 = vrot.slane %v2396_v19, 1  ;;  %v1734_v33 = vld [vmem:[%s3182_s1 + $0x208] sm:$0xff] }
  0x43   : > { %849 = vmatpush.msrb.mxu3 %v315_v34  ;;  %910 = vmatpush.msrb.mxu0 %v335_v35  ;;  %v1749_v34 = vld [vmem:[%s3182_s1 + $0x280] sm:$0xff]  ;;  %v434_v41 = vsel %vm428_vm0, %v432_v29, %v433_v30  ;;  %v351_v29 = vld [vmem:[%s3182_s1 + $0x158] sm:$0xff] }
  0x44   : > { %719 = vmatpush.msrb.mxu1 %v1740_v36  ;;  %785 = vmatpush.msrb.mxu2 %v1755_v39  ;;  %v308_v35 = vld [vmem:[%s3182_s1] sm:$0xff] }
  0x45   : > { %850 = vmatpush.msrb.mxu3 %v314_v42  ;;  %911 = vmatpush.msrb.mxu0 %v334_v43  ;;  %v328_v36 = vld [vmem:[%s3182_s1 + $0xa0] sm:$0xff]  ;;  %v437_v42 = vsel %vm428_vm0, %v435_v31, %v436_v32  ;;  %v327_v43 = vld [vmem:[%s3182_s1 + $0x98] sm:$0xff]  ;;  %v1775_v31 = vld [vmem:[%s3182_s1 + $0x350] sm:$0xff] }
  0x46   : > { %720 = vmatpush.msrb.mxu1 %v1739_v45  ;;  %786 = vmatpush.msrb.mxu2 %v1754_v46  ;;  %v1733_v39 = vld [vmem:[%s3182_s1 + $0x200] sm:$0xff]  ;;  %v1780_v46 = vld [vmem:[%s3182_s1 + $0x378] sm:$0xff] }
  0x47   : > { %851 = vmatpush.msrb.mxu3 %v313_v49  ;;  %912 = vmatpush.msrb.mxu0 %v333_v50  ;;  %v2448_v45 = vld [vmem:[%s2111_s29 + $0x40] sm:$0x3]  ;;  %v355_v49 = vld [vmem:[%s3182_s1 + $0x178] sm:$0xff]  ;;  %v440_v50 = vrot.slane %v2445_v44, 1 }
  0x48   : > { %721 = vmatpush.msrb.mxu1 %v1738_v53  ;;  %787 = vmatpush.msrb.mxu2 %v1753_v54  ;;  %v442_v51 = vrot.slane %v2448_v45, 1  ;;  %v1795_v53 = vld [vmem:[%s3182_s1 + $0x3f0] sm:$0xff] }
  0x49   : > { %852 = vmatpush.msrb.mxu3 %v312_v56  ;;  %913 = vmatpush.msrb.mxu0 %v332_v57  ;;  %v354_v54 = vld [vmem:[%s3182_s1 + $0x170] sm:$0xff]  ;;  %v1794_v56 = vld [vmem:[%s3182_s1 + $0x3e8] sm:$0xff]  ;;  %v324_v57 = vld [vmem:[%s3182_s1 + $0x80] sm:$0xff] }
  0x4a   : > { %722 = vmatpush.msrb.mxu1 %v1737_v58  ;;  %668 = vmatmul.f32.gmra.mxu0 %v446_v59  ;;  %v353_v58 = vld [vmem:[%s3182_s1 + $0x168] sm:$0xff]  ;;  %v441_v59 = vsel %vm428_vm0, %v433_v30, %v440_v50 }
  0x4b   : > { %683 = vmatmul.f32.gmra.mxu1 %v484_v60  ;;  %695 = vmatmul.f32.gmra.mxu2 %v514_v61  ;;  %v443_v60 = vsel %vm428_vm0, %v436_v32, %v442_v51  ;;  %v2492_v61 = vld [vmem:[%s2111_s29 + $0x50] sm:$0xff]  ;;  %v1810_v30 = vld [vmem:[%s3182_s1 + $0x468] sm:$0xff]  ;;  %v2575_v51 = vld [vmem:[%s2111_s29 + $0x98] sm:$0xff] }
  0x4c   : > { %707 = vmatmul.f32.gmra.mxu3 %v544_v4  ;;  %788 = vmatpush.msrb.mxu2 %v1752_v62  ;;  %v2495_v62 = vld [vmem:[%s2111_s29 + $0x68] sm:$0xff]  ;;  %v2498_v4 = vld [vmem:[%s2111_s29 + $0x58] sm:$0xff]  ;;  %v1791_v32 = vld [vmem:[%s3182_s1 + $0x3d0] sm:$0xff] }
  0x4d   : > { %853 = vmatpush.msrb.mxu3 %v311_v7  ;;  %914 = vmatpush.msrb.mxu0 %v331_v8  ;;  %v2501_v7 = vld [vmem:[%s2111_s29 + $0x70] sm:$0xff]  ;;  %v1812_v8 = vld [vmem:[%s3182_s1 + $0x478] sm:$0xff] }
  0x4e   : > { %723 = vmatpush.msrb.mxu1 %v1736_v9  ;;  %789 = vmatpush.msrb.mxu2 %v1751_v10  ;;  %v1777_v9 = vld [vmem:[%s3182_s1 + $0x360] sm:$0xff]  ;;  %v451_v24 = vrot.slane %v2501_v7, 1 }
  0x4f   : > { %854 = vmatpush.msrb.mxu3 %v310_v20  ;;  %915 = vmatpush.msrb.mxu0 %v330_v21  ;;  %v1793_v10 = vld [vmem:[%s3182_s1 + $0x3e0] sm:$0xff]  ;;  %v447_v21 = vrot.slane %v2492_v61, 1 }
  0x50   : > { %724 = vmatpush.msrb.mxu1 %v1735_v22  ;;  %790 = vmatpush.msrb.mxu2 %v1750_v23  ;;  %v352_v20 = vld [vmem:[%s3182_s1 + $0x160] sm:$0xff]  ;;  %v448_v22 = vrot.slane %v2495_v62, 1  ;;  %v450_v23 = vrot.slane %v2498_v4, 1 }
  0x51   : > { %855 = vmatpush.msrb.mxu3 %v309_v25  ;;  %916 = vmatpush.msrb.mxu0 %v329_v26  ;;  %v1811_v25 = vld [vmem:[%s3182_s1 + $0x470] sm:$0xff]  ;;  %v1776_v26 = vld [vmem:[%s3182_s1 + $0x358] sm:$0xff] }
  0x52   : > { %725 = vmatpush.msrb.mxu1 %v1734_v33  ;;  %791 = vmatpush.msrb.mxu2 %v1749_v34  ;;  %v449_v33 = vsel %vm428_vm0, %v447_v21, %v448_v22  ;;  %v452_v34 = vsel %vm428_vm0, %v450_v23, %v451_v24  ;;  %v2610_v21 = vld [vmem:[%s2111_s29 + $0xd0] sm:$0x3] }
  0x53   : > { %856 = vmatpush.msrb.mxu3 %v308_v35  ;;  %917 = vmatpush.msrb.mxu0 %v328_v36  ;;  %v2545_v35 = vld [vmem:[%s2111_s29 + $0x80] sm:$0x3]  ;;  %v2548_v36 = vld [vmem:[%s2111_s29 + $0x88] sm:$0x3]  ;;  %v472_v23 = vrot.slane %v2610_v21, 1 }
  0x54   : > { %726 = vmatpush.msrb.mxu1 %v1733_v39  ;;  %671 = vmatmul.f32.gmra.mxu0 %v454_v40  ;;  %v1809_v39 = vld [vmem:[%s3182_s1 + $0x460] sm:$0xff]  ;;  %v1808_v40 = vld [vmem:[%s3182_s1 + $0x458] sm:$0xff] }
  0x55   : > { %727 = vmatmul.f32.vlgmr.msrb.gmra.mxu1 %v434_v41  ;;  %792 = vmatmul.f32.vlgmr.msrb.gmra.mxu2 %v437_v42  ;;  %v455_v41 = vrot.slane %v2545_v35, 1  ;;  %v457_v42 = vrot.slane %v2548_v36, 1 }
  0x56   : > { %857 = vmatmul.f32.vlgmr.msrb.gmra.mxu3 %v2147_v27  ;;  %918 = vmatpush.msrb.mxu0 %v327_v43  ;;  %v325_v27 = vld [vmem:[%s3182_s1 + $0x88] sm:$0xff]  ;;  %v350_v43 = vld [vmem:[%s3182_s1 + $0x150] sm:$0xff] }
  0x57   : > { %1254 = vmatpush.msra.mxu2 %v1780_v46  ;;  %1319 = vmatpush.msra.mxu3 %v1796_v47  ;;  %v1774_v46 = vld [vmem:[%s3182_s1 + $0x348] sm:$0xff]  ;;  %v458_v50 = vsel %vm428_vm0, %v451_v24, %v457_v42  ;;  %v348_v24 = vld [vmem:[%s3182_s1 + $0x140] sm:$0xff]  ;;  %v347_v42 = vld [vmem:[%s3182_s1 + $0x138] sm:$0xff] }
  0x58   : > { %919 = vmatpush.msrb.mxu0 %v326_v48  ;;  %971 = vmatpush.msra.mxu1 %v355_v49  ;;  %v1790_v47 = vld [vmem:[%s3182_s1 + $0x3c8] sm:$0xff]  ;;  %v1807_v48 = vld [vmem:[%s3182_s1 + $0x450] sm:$0xff]  ;;  %v456_v49 = vsel %vm428_vm0, %v448_v22, %v455_v41 }
  0x59   : > { %1255 = vmatpush.msra.mxu2 %v1779_v52  ;;  %1320 = vmatpush.msra.mxu3 %v1795_v53  ;;  %v2578_v52 = vld [vmem:[%s2111_s29 + $0xb0] sm:$0xff]  ;;  %v2581_v53 = vld [vmem:[%s2111_s29 + $0xa0] sm:$0xff] }
  0x5a   : > { %920 = vmatpush.msrb.mxu0 %v325_v27  ;;  %972 = vmatpush.msra.mxu1 %v354_v54  ;;  %v2584_v27 = vld [vmem:[%s2111_s29 + $0xb8] sm:$0xff]  ;;  %v462_v54 = vrot.slane %v2575_v51, 1 }
  0x5b   : > { %1256 = vmatpush.msra.mxu2 %v1778_v55  ;;  %1321 = vmatpush.msra.mxu3 %v1794_v56  ;;  %v463_v55 = vrot.slane %v2578_v52, 1  ;;  %v465_v56 = vrot.slane %v2581_v53, 1 }
  0x5c   : > { %921 = vmatpush.msrb.mxu0 %v324_v57  ;;  %973 = vmatpush.msra.mxu1 %v353_v58  ;;  %v466_v57 = vrot.slane %v2584_v27, 1  ;;  %v349_v58 = vld [vmem:[%s3182_s1 + $0x148] sm:$0xff] }
  0x5d   : > { %730 = vmatmul.f32.gmra.mxu1 %v441_v59  ;;  %795 = vmatmul.f32.gmra.mxu2 %v443_v60  ;;  %v1773_v59 = vld [vmem:[%s3182_s1 + $0x340] sm:$0xff] }
  0x5e   : > { %860 = vmatmul.f32.gmra.mxu3 %v2150_v28  ;;  %922 = vmatmul.f32.vlgmr.msrb.gmra.mxu0 %v2387_v12  ;;  %v1792_v28 = vld [vmem:[%s3182_s1 + $0x3d8] sm:$0xff]  ;;  %v1789_v60 = vld [vmem:[%s3182_s1 + $0x3c0] sm:$0xff] }
  0x5f   : > { %1384 = vmatpush.msra.mxu0 %v1812_v8  ;;  %1257 = vmatpush.msra.mxu2 %v1777_v9  ;;  %v1806_v8 = vld [vmem:[%s3182_s1 + $0x448] sm:$0xff]  ;;  %v464_v9 = vsel %vm428_vm0, %v462_v54, %v463_v55 }
  0x60   : > { %1322 = vmatpush.msra.mxu3 %v1793_v10  ;;  %974 = vmatpush.msra.mxu1 %v352_v20  ;;  %v467_v10 = vsel %vm428_vm0, %v465_v56, %v466_v57  ;;  %v2607_v20 = vld [vmem:[%s2111_s29 + $0xc8] sm:$0x3]  ;;  %v346_v56 = vld [vmem:[%s3182_s1 + $0x130] sm:$0xff] }
  0x61   : > { %1385 = vmatpush.msra.mxu0 %v1811_v25  ;;  %1258 = vmatpush.msra.mxu2 %v1776_v26  ;;  %v470_v22 = vrot.slane %v2607_v20, 1  ;;  %v1772_v25 = vld [vmem:[%s3182_s1 + $0x338] sm:$0xff]  ;;  %v1805_v26 = vld [vmem:[%s3182_s1 + $0x440] sm:$0xff] }
  0x62   : > { %1323 = vmatpush.msra.mxu3 %v1792_v28  ;;  %975 = vmatpush.msra.mxu1 %v351_v29  ;;  %v473_v29 = vsel %vm428_vm0, %v466_v57, %v472_v23  ;;  %v1770_v57 = vld [vmem:[%s3182_s1 + $0x328] sm:$0xff] }
  0x63   : > { %1386 = vmatpush.msra.mxu0 %v1810_v30  ;;  %1259 = vmatpush.msra.mxu2 %v1775_v31  ;;  %v471_v28 = vsel %vm428_vm0, %v463_v55, %v470_v22  ;;  %v2631_v30 = vld [vmem:[%s2111_s29 + $0xe0] sm:$0xff]  ;;  %v2634_v31 = vld [vmem:[%s2111_s29 + $0xf8] sm:$0xff]  ;;  %v2696_v22 = vld [vmem:[%s2111_s29 + $0x148] sm:$0xff] }
  0x64   : > { %1324 = vmatpush.msra.mxu3 %v1791_v32  ;;  %976 = vmatpush.msra.mxu1 %v350_v43  ;;  %v2637_v32 = vld [vmem:[%s2111_s29 + $0xe8] sm:$0xff]  ;;  %v1771_v43 = vld [vmem:[%s3182_s1 + $0x330] sm:$0xff] }
  0x65   : > { %733 = vmatmul.f32.gmra.mxu1 %v449_v33  ;;  %798 = vmatmul.f32.gmra.mxu2 %v452_v34  ;;  %v2640_v33 = vld [vmem:[%s2111_s29 + $0x100] sm:$0xff]  ;;  %v477_v34 = vrot.slane %v2631_v30, 1 }
  0x66   : > { %863 = vmatmul.f32.gmra.mxu3 %v2310_v37  ;;  %925 = vmatmul.f32.gmra.mxu0 %v2390_v17  ;;  %v481_v41 = vrot.slane %v2640_v33, 1 }
  0x67   : > { %1387 = vmatpush.msra.mxu0 %v1809_v39  ;;  %1260 = vmatpush.msra.mxu2 %v1774_v46  ;;  %v478_v39 = vrot.slane %v2634_v31, 1  ;;  %v1804_v46 = vld [vmem:[%s3182_s1 + $0x438] sm:$0xff] }
  0x68   : > { %1325 = vmatpush.msra.mxu3 %v1790_v47  ;;  %977 = vmatpush.msra.mxu1 %v349_v58  ;;  %v1803_v58 = vld [vmem:[%s3182_s1 + $0x430] sm:$0xff] }
  0x69   : > { %1388 = vmatpush.msra.mxu0 %v1808_v40  ;;  %1261 = vmatpush.msra.mxu2 %v1773_v59  ;;  %v480_v40 = vrot.slane %v2637_v32, 1  ;;  %v479_v47 = vsel %vm428_vm0, %v477_v34, %v478_v39 }
  0x6a   : > { %1326 = vmatpush.msra.mxu3 %v1789_v60  ;;  %978 = vmatpush.msra.mxu1 %v348_v24 }
  0x6b   : > { %1389 = vmatpush.msra.mxu0 %v1807_v48  ;;  %1262 = vmatpush.msra.mxu2 %v1772_v25  ;;  %v482_v48 = vsel %vm428_vm0, %v480_v40, %v481_v41  ;;  %v2719_v40 = vld [vmem:[%s2111_s29 + $0x158] sm:$0x3] }
  0x6c   : > { %979 = vmatpush.msra.mxu1 %v347_v42  ;;  %v500_v42 = vrot.slane %v2719_v40, 1 }
  0x6d   : > { %736 = vmatmul.f32.gmra.mxu1 %v456_v49  ;;  %801 = vmatmul.f32.gmra.mxu2 %v458_v50  ;;  %v2663_v49 = vld [vmem:[%s2111_s29 + $0x110] sm:$0x3]  ;;  %v2666_v50 = vld [vmem:[%s2111_s29 + $0x118] sm:$0x3] }
  0x6e   : > { %866 = vmatmul.f32.gmra.mxu3 %v2313_v38  ;;  %928 = vmatmul.f32.gmra.mxu0 %v2492_v61  ;;  %v485_v54 = vrot.slane %v2663_v49, 1  ;;  %v487_v55 = vrot.slane %v2666_v50, 1 }
  0x6f   : > { %1390 = vmatpush.msra.mxu0 %v1806_v8  ;;  %1263 = vmatpush.msra.mxu2 %v1771_v43  ;;  %v2687_v8 = vld [vmem:[%s2111_s29 + $0x128] sm:$0xff] }
  0x70   : > { %980 = vmatpush.msra.mxu1 %v346_v56  ;;  %v486_v59 = vsel %vm428_vm0, %v478_v39, %v485_v54  ;;  %v488_v60 = vsel %vm428_vm0, %v481_v41, %v487_v55  ;;  %v492_v23 = vrot.slane %v2687_v8, 1  ;;  %v2722_v41 = vld [vmem:[%s2111_s29 + $0x160] sm:$0x3]  ;;  %v2743_v55 = vld [vmem:[%s2111_s29 + $0x170] sm:$0xff]  ;;  %v2746_v56 = vld [vmem:[%s2111_s29 + $0x188] sm:$0xff] }
  0x71   : > { %1391 = vmatpush.msra.mxu0 %v1805_v26  ;;  %1264 = vmatpush.msra.mxu2 %v1770_v57  ;;  %v345_v26 = vld [vmem:[%s3182_s1 + $0x128] sm:$0xff]  ;;  %v502_v43 = vrot.slane %v2722_v41, 1  ;;  %v2749_v57 = vld [vmem:[%s2111_s29 + $0x178] sm:$0xff] }
  0x72   : > { %981 = vmatpush.msra.mxu1 %v345_v26 }
  0x73   : > { %1392 = vmatpush.msra.mxu0 %v1804_v46  ;;  %v1768_v46 = vld [vmem:[%s3182_s1 + $0x318] sm:$0xff] }
  0x75   : > { %739 = vmatmul.f32.gmra.mxu1 %v464_v9  ;;  %804 = vmatmul.f32.gmra.mxu2 %v467_v10  ;;  %v2690_v9 = vld [vmem:[%s2111_s29 + $0x140] sm:$0xff]  ;;  %v2693_v10 = vld [vmem:[%s2111_s29 + $0x130] sm:$0xff] }
  0x76   : > { %869 = vmatmul.f32.gmra.mxu3 %v2120_v13  ;;  %931 = vmatmul.f32.gmra.mxu0 %v2495_v62  ;;  %v1788_v13 = vld [vmem:[%s3182_s1 + $0x3b8] sm:$0xff]  ;;  %v493_v24 = vrot.slane %v2690_v9, 1  ;;  %v495_v25 = vrot.slane %v2693_v10, 1 }
  0x77   : > { %1327 = vmatpush.msra.mxu3 %v1788_v13  ;;  %1393 = vmatpush.msra.mxu0 %v1803_v58  ;;  %v496_v13 = vrot.slane %v2696_v22, 1  ;;  %v507_v58 = vrot.slane %v2743_v55, 1 }
  0x78   : > { %v494_v34 = vsel %vm428_vm0, %v492_v23, %v493_v24 }
  0x79   : > { %v497_v39 = vsel %vm428_vm0, %v495_v25, %v496_v13  ;;  %v503_v54 = vsel %vm428_vm0, %v496_v13, %v502_v43  ;;  %v1767_v25 = vld [vmem:[%s3182_s1 + $0x310] sm:$0xff]  ;;  %v1800_v13 = vld [vmem:[%s3182_s1 + $0x418] sm:$0xff]  ;;  %v1766_v43 = vld [vmem:[%s3182_s1 + $0x308] sm:$0xff] }
  0x7d   : > { %742 = vmatmul.f32.gmra.mxu1 %v471_v28  ;;  %807 = vmatmul.f32.gmra.mxu2 %v473_v29  ;;  %v1769_v28 = vld [vmem:[%s3182_s1 + $0x320] sm:$0xff]  ;;  %v1802_v29 = vld [vmem:[%s3182_s1 + $0x428] sm:$0xff] }
  0x7e   : > { %872 = vmatmul.f32.gmra.mxu3 %v2123_v14  ;;  %934 = vmatmul.f32.gmra.mxu0 %v2575_v51  ;;  %v1787_v14 = vld [vmem:[%s3182_s1 + $0x3b0] sm:$0xff] }
  0x7f   : > { %1328 = vmatpush.msra.mxu3 %v1787_v14  ;;  %1265 = vmatpush.msra.mxu2 %v1769_v28  ;;  %v344_v14 = vld [vmem:[%s3182_s1 + $0x120] sm:$0xff] }
  0x80   : > { %1394 = vmatpush.msra.mxu0 %v1802_v29  ;;  %982 = vmatpush.msra.mxu1 %v344_v14  ;;  %v2778_v29 = vld [vmem:[%s2111_s29 + $0x1a8] sm:$0x3]  ;;  %v1799_v14 = vld [vmem:[%s3182_s1 + $0x410] sm:$0xff] }
  0x81   : > { %1266 = vmatpush.msra.mxu2 %v1768_v46  ;;  %3207 = vst [vmem:[#allocation3_spill] sm:$0xff] %v2778_v29 }
  0x83   : > { %1267 = vmatpush.msra.mxu2 %v1767_v25 }
  0x85   : > { %745 = vmatmul.f32.gmra.mxu1 %v479_v47  ;;  %810 = vmatmul.f32.gmra.mxu2 %v482_v48  ;;  %v1801_v47 = vld [vmem:[%s3182_s1 + $0x420] sm:$0xff]  ;;  %v501_v48 = vsel %vm428_vm0, %v493_v24, %v500_v42  ;;  %v343_v24 = vld [vmem:[%s3182_s1 + $0x118] sm:$0xff]  ;;  %v342_v42 = vld [vmem:[%s3182_s1 + $0x110] sm:$0xff] }
  0x86   : > { %875 = vmatmul.f32.gmra.mxu3 %v2231_v0  ;;  %937 = vmatmul.f32.gmra.mxu0 %v2578_v52  ;;  %v1786_v0 = vld [vmem:[%s3182_s1 + $0x3a8] sm:$0xff] }
  0x87   : > { %1329 = vmatpush.msra.mxu3 %v1786_v0  ;;  %1395 = vmatpush.msra.mxu0 %v1801_v47  ;;  %v2752_v0 = vld [vmem:[%s2111_s29 + $0x190] sm:$0xff]  ;;  %v2799_v47 = vld [vmem:[%s2111_s29 + $0x1b8] sm:$0xff] }
  0x88   : > { %3206 = vst [vmem:[#allocation2_spill] sm:$0xff] %v2752_v0  ;;  %v511_v23 = vrot.slane %v2752_v0, 1  ;;  %983 = vmatpush.msra.mxu1 %v343_v24  ;;  %1268 = vmatpush.msra.mxu2 %v1766_v43  ;;  %v522_v24 = vrot.slane %v2799_v47, 1  ;;  %v1040_v0 = vrot.slane %v2387_v12, 2  ;;  %v1048_v12 = vrot.slane %v2445_v44, 2 }
  0x89   : > { %1396 = vmatpush.msra.mxu0 %v1800_v13  ;;  %3208 = vst [vmem:[#allocation4_spill] sm:$0xff] %v2799_v47  ;;  %v1765_v13 = vld [vmem:[%s3182_s1 + $0x300] sm:$0xff]  ;;  %v1053_v44 = vrot.slane %v2313_v38, 2 }
  0x8a   : > { %984 = vmatpush.msra.mxu1 %v342_v42  ;;  %1269 = vmatpush.msra.mxu2 %v1765_v13  ;;  %v1797_v13 = vld [vmem:[%s3182_s1 + $0x400] sm:$0xff] }
  0x8b   : > { %1397 = vmatpush.msra.mxu0 %v1799_v14  ;;  %v2842_v14 = vld [vmem:[%s2111_s29 + $0x1f0] sm:$0x3] }
  0x8c   : > { %3214 = vst [vmem:[#allocation10_spill] sm:$0xff] %v2842_v14 }
  0x8d   : > { %748 = vmatmul.f32.gmra.mxu1 %v486_v59  ;;  %813 = vmatmul.f32.gmra.mxu2 %v488_v60  ;;  %v508_v59 = vrot.slane %v2746_v56, 1  ;;  %v510_v60 = vrot.slane %v2749_v57, 1 }
  0x8e   : > { %878 = vmatmul.f32.gmra.mxu3 %v2234_v1  ;;  %940 = vmatmul.f32.gmra.mxu0 %v2631_v30  ;;  %v1785_v1 = vld [vmem:[%s3182_s1 + $0x3a0] sm:$0xff] }
  0x8f   : > { %1330 = vmatpush.msra.mxu3 %v1785_v1  ;;  %v509_v26 = vsel %vm428_vm0, %v507_v58, %v508_v59  ;;  %v512_v28 = vsel %vm428_vm0, %v510_v60, %v511_v23  ;;  %v2775_v1 = vld [vmem:[%s2111_s29 + $0x1a0] sm:$0x3]  ;;  %v2810_v60 = vld [vmem:[%s2111_s29 + $0x1d8] sm:$0xff] }
  0x90   : > { %v2807_v58 = vld [vmem:[%s2111_s29 + $0x1c0] sm:$0xff]  ;;  %3211 = vst [vmem:[#allocation7_spill] sm:$0xff] %v2810_v60  ;;  %v526_v25 = vrot.slane %v2810_v60, 1  ;;  %v2869_v60 = vld [vmem:[%s2111_s29 + $0x218] sm:$0xff] }
  0x91   : > { %3210 = vst [vmem:[#allocation6_spill] sm:$0xff] %v2807_v58 }
  0x92   : > { %3218 = vst [vmem:[#allocation14_spill] sm:$0xff] %v2869_v60 }
  0x95   : > { %751 = vmatmul.f32.gmra.mxu1 %v494_v34  ;;  %816 = vmatmul.f32.gmra.mxu2 %v497_v39  ;;  %v515_v34 = vrot.slane %v2775_v1, 1  ;;  %v517_v39 = vrot.slane %v2778_v29, 1  ;;  %v2896_v29 = vld [vmem:[%s2111_s29 + $0x238] sm:$0x3] }
  0x96   : > { %881 = vmatmul.f32.gmra.mxu3 %v2126_v15  ;;  %943 = vmatmul.f32.gmra.mxu0 %v2634_v31  ;;  %v1784_v15 = vld [vmem:[%s3182_s1 + $0x398] sm:$0xff]  ;;  %3223 = vst [vmem:[#allocation19_spill] sm:$0xff] %v2896_v29 }
  0x97   : > { %1331 = vmatpush.msra.mxu3 %v1784_v15  ;;  %v516_v46 = vsel %vm428_vm0, %v508_v59, %v515_v34  ;;  %v518_v15 = vsel %vm428_vm0, %v511_v23, %v517_v39  ;;  %v525_v23 = vrot.slane %v2807_v58, 1  ;;  %v2893_v58 = vld [vmem:[%s2111_s29 + $0x230] sm:$0x3] }
  0x98   : > { %3222 = vst [vmem:[#allocation18_spill] sm:$0xff] %v2893_v58 }
  0x99   : > { %v527_v34 = vsel %vm428_vm0, %v525_v23, %v526_v25 }
  0x9d   : > { %754 = vmatmul.f32.gmra.mxu1 %v501_v48  ;;  %819 = vmatmul.f32.gmra.mxu2 %v503_v54  ;;  %v2804_v54 = vld [vmem:[%s2111_s29 + $0x1d0] sm:$0xff] }
  0x9e   : > { %884 = vmatmul.f32.gmra.mxu3 %v2129_v16  ;;  %946 = vmatmul.f32.gmra.mxu0 %v2687_v8  ;;  %v1783_v16 = vld [vmem:[%s3182_s1 + $0x390] sm:$0xff]  ;;  %3209 = vst [vmem:[#allocation5_spill] sm:$0xff] %v2804_v54  ;;  %v523_v59 = vrot.slane %v2804_v54, 1 }
  0x9f   : > { %1332 = vmatpush.msra.mxu3 %v1783_v16  ;;  %v341_v16 = vld [vmem:[%s3182_s1 + $0x108] sm:$0xff] }
  0xa0   : > { %985 = vmatpush.msra.mxu1 %v341_v16  ;;  %v532_v16 = vrot.slane %v2842_v14, 1  ;;  %v2875_v14 = vld [vmem:[%s2111_s29 + $0x220] sm:$0xff] }
  0xa1   : > { %3220 = vst [vmem:[#allocation16_spill] sm:$0xff] %v2875_v14 }
  0xa5   : > { %757 = vmatmul.f32.gmra.mxu1 %v509_v26  ;;  %822 = vmatmul.f32.gmra.mxu2 %v512_v28  ;;  %v1798_v26 = vld [vmem:[%s3182_s1 + $0x408] sm:$0xff]  ;;  %v524_v28 = vsel %vm428_vm0, %v522_v24, %v523_v59  ;;  %v2850_v24 = vld [vmem:[%s2111_s29 + $0x1b0] sm:$0xff] }
  0xa6   : > { %887 = vmatmul.f32.gmra.mxu3 %v2237_v2  ;;  %949 = vmatmul.f32.gmra.mxu0 %v2690_v9  ;;  %v1782_v2 = vld [vmem:[%s3182_s1 + $0x388] sm:$0xff]  ;;  %3215 = vst [vmem:[#allocation11_spill] sm:$0xff] %v2850_v24 }
  0xa7   : > { %1333 = vmatpush.msra.mxu3 %v1782_v2  ;;  %1398 = vmatpush.msra.mxu0 %v1798_v26  ;;  %v2839_v2 = vld [vmem:[%s2111_s29 + $0x1e8] sm:$0x3]  ;;  %v533_v26 = vsel %vm428_vm0, %v526_v25, %v532_v16  ;;  %v538_v16 = vrot.slane %v2869_v60, 1 }
  0xa8   : > { %3213 = vst [vmem:[#allocation9_spill] sm:$0xff] %v2839_v2  ;;  %v530_v23 = vrot.slane %v2839_v2, 1  ;;  %v2872_v2 = vld [vmem:[%s2111_s29 + $0x208] sm:$0xff] }
  0xa9   : > { %1399 = vmatpush.msra.mxu0 %v1797_v13  ;;  %3219 = vst [vmem:[#allocation15_spill] sm:$0xff] %v2872_v2 }
  0xab   : > { %v2801_v48 = vpop.f32.mrf.mxu1 }
  0xad   : > { %760 = vmatmul.f32.gmra.mxu1 %v516_v46  ;;  %825 = vmatmul.f32.gmra.mxu2 %v518_v15  ;;  %v340_v46 = vld [vmem:[%s3182_s1 + $0x100] sm:$0xff] }
  0xae   : > { %890 = vmatmul.f32.gmra.mxu3 %v2240_v3  ;;  %952 = vmatmul.f32.gmra.mxu0 %v2743_v55  ;;  %v1781_v3 = vld [vmem:[%s3182_s1 + $0x380] sm:$0xff] }
  0xaf   : > { %1334 = vmatpush.msra.mxu3 %v1781_v3  ;;  %986 = vmatpush.msra.mxu1 %v340_v46  ;;  %v531_v3 = vsel %vm428_vm0, %v523_v59, %v530_v23  ;;  %v2880_v59 = vld [vmem:[%s2111_s29 + $0x1c8] sm:$0xff] }
  0xb0   : > { %v2836_v43 = vpop.f32.mrf.mxu0  ;;  %3221 = vst [vmem:[#allocation17_spill] sm:$0xff] %v2880_v59 }
  0xb2   : > { %v2832_v39 = vpop.f32.mrf.mxu2  ;;  %v2834_v42 = vpop.f32.mrf.mxu3 }
  0xb3   : > { %3212 = vst [vmem:[#allocation8_spill] sm:$0xff] %v2834_v42  ;;  %v541_v42 = vrot.slane %v2875_v14, 1 }
  0xb5   : > { %763 = vmatmul.f32.gmra.mxu1 %v524_v28  ;;  %828 = vmatmul.f32.gmra.mxu2 %v527_v34  ;;  %v2847_v15 = vpop.f32.mrf.mxu1  ;;  %v2864_v34 = vld [vmem:[%s2111_s29 + $0x200] sm:$0xff] }
  0xb6   : > { %893 = vmatmul.f32.gmra.mxu3 %v2850_v24  ;;  %955 = vmatmul.f32.gmra.mxu0 %v2746_v56  ;;  %3216 = vst [vmem:[#allocation12_spill] sm:$0xff] %v2864_v34  ;;  %v537_v23 = vrot.slane %v2864_v34, 1 }
  0xba   : > { %v2861_v28 = vpop.f32.mrf.mxu2 }
  0xbb   : > { %v2866_v46 = vpop.f32.mrf.mxu3 }
  0xbc   : > { %3217 = vst [vmem:[#allocation13_spill] sm:$0xff] %v2866_v46  ;;  %v540_v46 = vrot.slane %v2872_v2, 1 }
  0xbd   : > { %766 = vmatmul.f32.gmra.mxu1 %v531_v3  ;;  %831 = vmatmul.f32.gmra.mxu2 %v533_v26  ;;  %v2877_v13 = vpop.f32.mrf.mxu0  ;;  %v539_v3 = vsel %vm428_vm0, %v537_v23, %v538_v16  ;;  %v545_v23 = vrot.slane %v2893_v58, 1 }
  0xbe   : > { %896 = vmatmul.f32.gmra.mxu3 %v2880_v59  ;;  %958 = vmatmul.f32.gmra.mxu0 %v2799_v47  ;;  %v2884_v25 = vpop.f32.mrf.mxu1  ;;  %v542_v26 = vsel %vm428_vm0, %v540_v46, %v541_v42  ;;  %v547_v46 = vrot.slane %v2896_v29, 1 }
  0xbf   : > { %v546_v24 = vsel %vm428_vm0, %v538_v16, %v545_v23  ;;  %v1041_v16 = vrot.slane %v2390_v17, 2  ;;  %v1043_v17 = vrot.slane %v2393_v18, 2 }
  0xc1   : > { %v1042_v23 = vsel %vm1036_vm1, %v1040_v0, %v1041_v16 }
  0xc4   : > { %v2898_v59 = vpop.f32.mrf.mxu2 }
  0xc5   : > { %769 = vmatmul.f32.gmra.mxu1 %v539_v3  ;;  %834 = vmatmul.f32.gmra.mxu2 %v542_v26  ;;  %v2900_v47 = vpop.f32.mrf.mxu3  ;;  %v548_v3 = vsel %vm428_vm0, %v541_v42, %v547_v46  ;;  %v1954_v26 = vld [vmem:[%s2111_s29] sm:$0xff] }
  0xc6   : > { %3224 = vst [vmem:[#allocation20_spill] sm:$0xff] %v2900_v47  ;;  %899 = vmatmul.f32.gmra.mxu3 %v2246_v5  ;;  %961 = vmatmul.f32.gmra.mxu0 %v2804_v54  ;;  %v1037_v58 = vrot.slane %v1954_v26, 2  ;;  %v1955_v47 = vld [vmem:[%s2111_s29 + $0x18] sm:$0xff] }
  0xc7   : > { %v2906_v14 = vpop.f32.mrf.mxu0  ;;  %v1038_v29 = vrot.slane %v1955_v47, 2  ;;  %v1046_v47 = vrot.slane %v2228_v63, 2  ;;  %v1049_v63 = vsel %vm1036_vm1, %v1041_v16, %v1048_v12 }
  0xc8   : > { %v2908_v2 = vpop.f32.mrf.mxu1 }
  0xcd   : > { %772 = vmatmul.f32.gmra.mxu1 %v546_v24  ;;  %837 = vmatmul.f32.gmra.mxu2 %v548_v3  ;;  %v1044_v3 = vrot.slane %v2396_v19, 2 }
  0xce   : > { %902 = vmatmul.f32.gmra.mxu3 %v2249_v6  ;;  %964 = vmatmul.f32.gmra.mxu0 %v2864_v34  ;;  %v2914_v5 = vpop.f32.mrf.mxu2  ;;  %v1039_v6 = vsel %vm1036_vm1, %v1037_v58, %v1038_v29  ;;  %v1047_v34 = vsel %vm1036_vm1, %v1038_v29, %v1046_v47  ;;  %v1055_v29 = vrot.slane %v2492_v61, 2 }
  0xcf   : > { %v2918_v54 = vpop.f32.mrf.mxu3 }
  0xd0   : > { %3225 = vst [vmem:[#allocation21_spill] sm:$0xff] %v2918_v54 }
  0xd1   : > { %v2922_v42 = vpop.f32.mrf.mxu0 }
  0xd2   : > { %v728_v24 = vpop.f32.mrf.mxu1 }
  0xd3   : > { %v729_v46 = vadd.f32 %v728_v24, %v2836_v43  ;;  %v1045_v43 = vsel %vm1036_vm1, %v1043_v17, %v1044_v3 }
  0xd5   : > { %987 = vmatmul.f32.vlgmr.msra.gmra.mxu1 %v2393_v18  ;;  %1270 = vmatmul.f32.vlgmr.msra.gmra.mxu2 %v1039_v6  ;;  %v1052_v18 = vrot.slane %v2310_v37, 2 }
  0xd6   : > { %967 = vmatmul.f32.gmra.mxu0 %v2869_v60  ;;  %1335 = vmatmul.f32.vlgmr.msra.gmra.mxu3 %v1042_v23  ;;  %v1050_v23 = vrot.slane %v2448_v45, 2  ;;  %v1061_v45 = vrot.slane %v2384_v11, 2 }
  0xd8   : > { %v793_v26 = vpop.f32.mrf.mxu2  ;;  %v1051_v38 = vsel %vm1036_vm1, %v1044_v3, %v1050_v23 }
  0xd9   : > { %v794_v58 = vadd.f32 %v793_v26, %v729_v46  ;;  %v858_v54 = vpop.f32.mrf.mxu3  ;;  %v1059_v26 = vrot.slane %v2501_v7, 2 }
  0xda   : > { %v731_v0 = vpop.f32.mrf.mxu1 }
  0xdb   : > { %v2934_v6 = vadd.f32 %v858_v54, %v794_v58  ;;  %v2936_v60 = vpop.f32.mrf.mxu0  ;;  %v732_v24 = vadd.f32 %v731_v0, %v2877_v13  ;;  %v1056_v54 = vrot.slane %v2495_v62, 2  ;;  %v1063_v62 = vrot.slane %v2545_v35, 2 }
  0xdc   : > { %v1058_v13 = vrot.slane %v2498_v4, 2 }
  0xdd   : > { %990 = vmatmul.f32.gmra.mxu1 %v2396_v19  ;;  %1273 = vmatmul.f32.gmra.mxu2 %v1047_v34  ;;  %v1054_v19 = vsel %vm1036_vm1, %v1052_v18, %v1053_v44  ;;  %v1057_v37 = vsel %vm1036_vm1, %v1055_v29, %v1056_v54  ;;  %v1064_v11 = vsel %vm1036_vm1, %v1056_v54, %v1063_v62  ;;  %v1957_v29 = vld [vmem:[%s2111_s29 + $0xa8] sm:$0xff]  ;;  %v1065_v54 = vrot.slane %v2548_v36, 2  ;;  %v1958_v36 = vld [vmem:[%s2111_s29 + $0xc0] sm:$0x3] }
  0xde   : > { %1338 = vmatmul.f32.gmra.mxu3 %v1049_v63  ;;  %1400 = vmatmul.f32.vlgmr.msra.gmra.mxu0 %v1045_v43  ;;  %v1062_v43 = vsel %vm1036_vm1, %v1053_v44, %v1061_v45  ;;  %v1060_v35 = vsel %vm1036_vm1, %v1058_v13, %v1059_v26  ;;  %v1068_v23 = vrot.slane %v1957_v29, 2  ;;  %v1070_v44 = vrot.slane %v2575_v51, 2 }
  0xdf   : > { %v1076_v51 = vrot.slane %v1958_v36, 2  ;;  %v1078_v62 = vrot.slane %v2607_v20, 2  ;;  %v1073_v13 = vrot.slane %v2581_v53, 2  ;;  %v1088_v36 = vrot.slane %v2637_v32, 2 }
  0xe0   : > { %v796_v16 = vpop.f32.mrf.mxu2 }
  0xe1   : > { %v797_v47 = vadd.f32 %v796_v16, %v732_v24  ;;  %v861_v46 = vpop.f32.mrf.mxu3 }
  0xe2   : > { %v734_v12 = vpop.f32.mrf.mxu1 }
  0xe3   : > { %v2948_v34 = vadd.f32 %v861_v46, %v797_v47  ;;  %v2950_v17 = vpop.f32.mrf.mxu0  ;;  %v735_v61 = vadd.f32 %v734_v12, %v2906_v14  ;;  %v1071_v47 = vrot.slane %v2578_v52, 2 }
  0xe5   : > { %993 = vmatmul.f32.gmra.mxu1 %v2498_v4  ;;  %1276 = vmatmul.f32.gmra.mxu2 %v1054_v19  ;;  %v1956_v4 = vld [vmem:[%s2111_s29 + $0x90] sm:$0xff] }
  0xe6   : > { %1341 = vmatmul.f32.gmra.mxu3 %v1057_v37  ;;  %1403 = vmatmul.f32.gmra.mxu0 %v1051_v38  ;;  %v1067_v14 = vrot.slane %v1956_v4, 2 }
  0xe8   : > { %v799_v58 = vpop.f32.mrf.mxu2  ;;  %v1069_v37 = vsel %vm1036_vm1, %v1067_v14, %v1068_v23  ;;  %v1960_v14 = vld [vmem:[%s2111_s29 + $0xf0] sm:$0xff] }
  0xe9   : > { %v800_v0 = vadd.f32 %v799_v58, %v735_v61  ;;  %v864_v3 = vpop.f32.mrf.mxu3  ;;  %v1072_v61 = vsel %vm1036_vm1, %v1070_v44, %v1071_v47  ;;  %v1074_v58 = vrot.slane %v2584_v27, 2  ;;  %v1083_v29 = vrot.slane %v1960_v14, 2 }
  0xea   : > { %v737_v63 = vpop.f32.mrf.mxu1  ;;  %v1086_v44 = vrot.slane %v2634_v31, 2  ;;  %v1095_v14 = vrot.slane %v2666_v50, 2  ;;  %v1964_v50 = vld [vmem:[%s2111_s29 + $0x150] sm:$0x3] }
  0xeb   : > { %v2961_v18 = vadd.f32 %v864_v3, %v800_v0  ;;  %v2963_v24 = vpop.f32.mrf.mxu0  ;;  %v738_v16 = vadd.f32 %v737_v63, %v2922_v42  ;;  %v1066_v42 = vsel %vm1036_vm1, %v1059_v26, %v1065_v54  ;;  %v1075_v20 = vsel %vm1036_vm1, %v1073_v13, %v1074_v58 }
  0xed   : > { %996 = vmatmul.f32.gmra.mxu1 %v2501_v7  ;;  %1279 = vmatmul.f32.gmra.mxu2 %v1062_v43  ;;  %v1077_v43 = vsel %vm1036_vm1, %v1068_v23, %v1076_v51  ;;  %v1085_v23 = vrot.slane %v2631_v30, 2  ;;  %v1089_v51 = vrot.slane %v2640_v33, 2 }
  0xee   : > { %1344 = vmatmul.f32.gmra.mxu3 %v1064_v11  ;;  %1406 = vmatmul.f32.gmra.mxu0 %v1060_v35 }
  0xf0   : > { %v802_v46 = vpop.f32.mrf.mxu2 }
  0xf1   : > { %v803_v12 = vadd.f32 %v802_v46, %v738_v16  ;;  %v867_v19 = vpop.f32.mrf.mxu3 }
  0xf2   : > { %v740_v7 = vpop.f32.mrf.mxu1 }
  0xf3   : > { %v2975_v38 = vadd.f32 %v867_v19, %v803_v12  ;;  %v2977_v45 = vpop.f32.mrf.mxu0  ;;  %v741_v52 = vadd.f32 %v740_v7, %v2801_v48  ;;  %v1079_v48 = vsel %vm1036_vm1, %v1071_v47, %v1078_v62  ;;  %v1080_v47 = vrot.slane %v2610_v21, 2  ;;  %v1961_v21 = vld [vmem:[%s2111_s29 + $0x108] sm:$0x3] }
  0xf4   : > { %v1091_v30 = vrot.slane %v1961_v21, 2 }
  0xf5   : > { %999 = vmatmul.f32.gmra.mxu1 %v2581_v53  ;;  %1282 = vmatmul.f32.gmra.mxu2 %v1069_v37  ;;  %v1959_v53 = vld [vmem:[%s2111_s29 + $0xd8] sm:$0xff] }
  0xf6   : > { %1347 = vmatmul.f32.gmra.mxu3 %v1072_v61  ;;  %1409 = vmatmul.f32.gmra.mxu0 %v1066_v42  ;;  %v1082_v4 = vrot.slane %v1959_v53, 2  ;;  %v1087_v61 = vsel %vm1036_vm1, %v1085_v23, %v1086_v44  ;;  %v1093_v42 = vrot.slane %v2663_v49, 2  ;;  %v1090_v49 = vsel %vm1036_vm1, %v1088_v36, %v1089_v51 }
  0xf7   : > { %v1100_v53 = vrot.slane %v2687_v8, 2  ;;  %v1106_v8 = vrot.slane %v1964_v50, 2 }
  0xf8   : > { %v805_v0 = vpop.f32.mrf.mxu2  ;;  %v1084_v19 = vsel %vm1036_vm1, %v1082_v4, %v1083_v29  ;;  %v1101_v4 = vrot.slane %v2690_v9, 2 }
  0xf9   : > { %v806_v3 = vadd.f32 %v805_v0, %v741_v52  ;;  %v870_v26 = vpop.f32.mrf.mxu3  ;;  %v1092_v0 = vsel %vm1036_vm1, %v1083_v29, %v1091_v30 }
  0xfa   : > { %v743_v63 = vpop.f32.mrf.mxu1 }
  0xfb   : > { %v2988_v11 = vadd.f32 %v870_v26, %v806_v3  ;;  %v2990_v35 = vpop.f32.mrf.mxu0  ;;  %v744_v16 = vadd.f32 %v743_v63, %v2847_v15  ;;  %v1081_v15 = vsel %vm1036_vm1, %v1074_v58, %v1080_v47 }
  0xfd   : > { %1002 = vmatmul.f32.gmra.mxu1 %v2584_v27  ;;  %1285 = vmatmul.f32.gmra.mxu2 %v1077_v43  ;;  %v1963_v43 = vld [vmem:[%s2111_s29 + $0x138] sm:$0xff] }
  0xfe   : > { %1350 = vmatmul.f32.gmra.mxu3 %v1079_v48  ;;  %1412 = vmatmul.f32.gmra.mxu0 %v1075_v20  ;;  %v1098_v48 = vrot.slane %v1963_v43, 2 }
 0x100   : > { %v808_v54 = vpop.f32.mrf.mxu2 }
 0x101   : > { %v809_v46 = vadd.f32 %v808_v54, %v744_v16  ;;  %v873_v12 = vpop.f32.mrf.mxu3 }
 0x102   : > { %v746_v27 = vpop.f32.mrf.mxu1 }
 0x103   : > { %v3002_v7 = vadd.f32 %v873_v12, %v809_v46  ;;  %v3004_v37 = vpop.f32.mrf.mxu0  ;;  %v747_v31 = vadd.f32 %v746_v27, %v2884_v25  ;;  %v1094_v25 = vsel %vm1036_vm1, %v1086_v44, %v1093_v42  ;;  %v1102_v46 = vsel %vm1036_vm1, %v1100_v53, %v1101_v4 }
 0x104   : > { %v1108_v12 = vrot.slane %v2719_v40, 2  ;;  %v1103_v27 = vrot.slane %v2693_v10, 2 }
 0x105   : > { %1005 = vmatmul.f32.gmra.mxu1 %v2637_v32  ;;  %1288 = vmatmul.f32.gmra.mxu2 %v1084_v19  ;;  %v1962_v32 = vld [vmem:[%s2111_s29 + $0x120] sm:$0xff]  ;;  %v1104_v19 = vrot.slane %v2696_v22, 2 }
 0x106   : > { %1353 = vmatmul.f32.gmra.mxu3 %v1087_v61  ;;  %1415 = vmatmul.f32.gmra.mxu0 %v1081_v15  ;;  %v1097_v63 = vrot.slane %v1962_v32, 2 }
 0x108   : > { %v811_v52 = vpop.f32.mrf.mxu2  ;;  %v1099_v44 = vsel %vm1036_vm1, %v1097_v63, %v1098_v48 }
 0x109   : > { %v812_v62 = vadd.f32 %v811_v52, %v747_v31  ;;  %v876_v13 = vpop.f32.mrf.mxu3  ;;  %v1107_v31 = vsel %vm1036_vm1, %v1098_v48, %v1106_v8 }
 0x10a   : > { %v749_v58 = vpop.f32.mrf.mxu1 }
 0x10b   : > { %v3015_v3 = vadd.f32 %v876_v13, %v812_v62  ;;  %v3017_v26 = vpop.f32.mrf.mxu0  ;;  %v750_v20 = vadd.f32 %v749_v58, %v2908_v2  ;;  %v1096_v2 = vsel %vm1036_vm1, %v1089_v51, %v1095_v14  ;;  %v1109_v51 = vsel %vm1036_vm1, %v1101_v4, %v1108_v12  ;;  %v1966_v62 = vld [vmem:[%s2111_s29 + $0x180] sm:$0xff] }
 0x10c   : > { %v1113_v13 = vrot.slane %v1966_v62, 2 }
 0x10d   : > { %1008 = vmatmul.f32.gmra.mxu1 %v2640_v33  ;;  %1291 = vmatmul.f32.gmra.mxu2 %v1092_v0  ;;  %v1115_v0 = vrot.slane %v2743_v55, 2 }
 0x10e   : > { %1356 = vmatmul.f32.gmra.mxu3 %v1094_v25  ;;  %1418 = vmatmul.f32.gmra.mxu0 %v1090_v49  ;;  %v1116_v25 = vrot.slane %v2746_v56, 2  ;;  %v1110_v49 = vrot.slane %v2722_v41, 2  ;;  %v1967_v41 = vld [vmem:[%s2111_s29 + $0x198] sm:$0x3] }
 0x10f   : > { %v1121_v55 = vrot.slane %v1967_v41, 2  ;;  %v3235_v41 = vld [vmem:[#allocation7_spill] sm:$0xff] }
 0x110   : > { %v814_v29 = vpop.f32.mrf.mxu2  ;;  %v1117_v4 = vsel %vm1036_vm1, %v1115_v0, %v1116_v25  ;;  %v1111_v14 = vsel %vm1036_vm1, %v1104_v19, %v1110_v49 }
 0x111   : > { %v815_v16 = vadd.f32 %v814_v29, %v750_v20  ;;  %v879_v23 = vpop.f32.mrf.mxu3  ;;  %v1123_v29 = vrot.slane %v2775_v1, 2  ;;  %v1122_v8 = vsel %vm1036_vm1, %v1113_v13, %v1121_v55  ;;  %v1134_v55 = vrot.slane %v3235_v41, 2 }
 0x112   : > { %v752_v33 = vpop.f32.mrf.mxu1 }
 0x113   : > { %v3029_v47 = vadd.f32 %v879_v23, %v815_v16  ;;  %v3031_v54 = vpop.f32.mrf.mxu0  ;;  %v753_v9 = vadd.f32 %v752_v33, %v2832_v39  ;;  %v1105_v39 = vsel %vm1036_vm1, %v1103_v27, %v1104_v19  ;;  %v1118_v16 = vrot.slane %v2749_v57, 2  ;;  %v3226_v23 = vld [vmem:[#allocation2_spill] sm:$0xff] }
 0x114   : > { %v1119_v33 = vrot.slane %v3226_v23, 2  ;;  %v1124_v27 = vsel %vm1036_vm1, %v1116_v25, %v1123_v29 }
 0x115   : > { %1011 = vmatmul.f32.gmra.mxu1 %v2693_v10  ;;  %1294 = vmatmul.f32.gmra.mxu2 %v1099_v44  ;;  %v1965_v10 = vld [vmem:[%s2111_s29 + $0x168] sm:$0xff] }
 0x116   : > { %1359 = vmatmul.f32.gmra.mxu3 %v1102_v46  ;;  %1421 = vmatmul.f32.gmra.mxu0 %v1096_v2  ;;  %v1112_v40 = vrot.slane %v1965_v10, 2  ;;  %v1120_v19 = vsel %vm1036_vm1, %v1118_v16, %v1119_v33 }
 0x118   : > { %v817_v61 = vpop.f32.mrf.mxu2  ;;  %v1114_v48 = vsel %vm1036_vm1, %v1112_v40, %v1113_v13 }
 0x119   : > { %v818_v15 = vadd.f32 %v817_v61, %v753_v9  ;;  %v882_v21 = vpop.f32.mrf.mxu3 }
 0x11a   : > { %v755_v30 = vpop.f32.mrf.mxu1 }
 0x11b   : > { %v883_v42 = vadd.f32 %v882_v21, %v818_v15  ;;  %v947_v36 = vpop.f32.mrf.mxu0  ;;  %v756_v58 = vadd.f32 %v755_v30, %v2861_v28  ;;  %v3229_v30 = vld [vmem:[#allocation4_spill] sm:$0xff] }
 0x11d   : > { %v3044_v52 = vadd.f32 %v947_v36, %v883_v42  ;;  %1014 = vmatmul.f32.gmra.mxu1 %v2696_v22  ;;  %1297 = vmatmul.f32.gmra.mxu2 %v1107_v31  ;;  %v1130_v31 = vrot.slane %v3229_v30, 2  ;;  %v3230_v42 = vld [vmem:[#allocation5_spill] sm:$0xff] }
 0x11e   : > { %1362 = vmatmul.f32.gmra.mxu3 %v1109_v51  ;;  %1424 = vmatmul.f32.gmra.mxu0 %v1105_v39  ;;  %v1131_v36 = vrot.slane %v3230_v42, 2  ;;  %v3231_v51 = vld [vmem:[#allocation3_spill] sm:$0xff] }
 0x11f   : > { %v1125_v39 = vrot.slane %v3231_v51, 2 }
 0x120   : > { %v820_v32 = vpop.f32.mrf.mxu2  ;;  %v1132_v49 = vsel %vm1036_vm1, %v1130_v31, %v1131_v36  ;;  %v3239_v31 = vld [vmem:[#allocation10_spill] sm:$0xff] }
 0x121   : > { %v821_v63 = vadd.f32 %v820_v32, %v756_v58  ;;  %v885_v43 = vpop.f32.mrf.mxu3  ;;  %v1126_v32 = vsel %vm1036_vm1, %v1119_v33, %v1125_v39  ;;  %v1140_v42 = vrot.slane %v3239_v31, 2 }
 0x122   : > { %v758_v22 = vpop.f32.mrf.mxu1 }
 0x123   : > { %v886_v20 = vadd.f32 %v885_v43, %v821_v63  ;;  %v950_v53 = vpop.f32.mrf.mxu0  ;;  %v759_v56 = vadd.f32 %v758_v22, %v2898_v59  ;;  %v3228_v59 = vld [vmem:[#allocation17_spill] sm:$0xff]  ;;  %v3232_v63 = vld [vmem:[#allocation6_spill] sm:$0xff] }
 0x124   : > { %v1128_v15 = vrot.slane %v3228_v59, 2  ;;  %v1968_v43 = vld [vmem:[%s2111_s29 + $0x1e0] sm:$0x3]  ;;  %v3237_v59 = vld [vmem:[#allocation12_spill] sm:$0xff] }
 0x125   : > { %v3056_v28 = vadd.f32 %v950_v53, %v886_v20  ;;  %1017 = vmatmul.f32.gmra.mxu1 %v2749_v57  ;;  %1300 = vmatmul.f32.gmra.mxu2 %v1114_v48  ;;  %v3227_v57 = vld [vmem:[#allocation11_spill] sm:$0xff]  ;;  %v1136_v22 = vrot.slane %v1968_v43, 2  ;;  %v3233_v48 = vld [vmem:[#allocation8_spill] sm:$0xff]  ;;  %v3234_v53 = vld [vmem:[#allocation9_spill] sm:$0xff] }
 0x126   : > { %1365 = vmatmul.f32.gmra.mxu3 %v1117_v4  ;;  %1427 = vmatmul.f32.gmra.mxu0 %v1111_v14  ;;  %v1127_v1 = vrot.slane %v3227_v57, 2  ;;  %v1138_v4 = vrot.slane %v3234_v53, 2  ;;  %v1133_v14 = vrot.slane %v3232_v63, 2  ;;  %v3236_v57 = vld [vmem:[#allocation13_spill] sm:$0xff]  ;;  %v3241_v43 = vld [vmem:[#allocation20_spill] sm:$0xff] }
 0x127   : > { %v1137_v33 = vsel %vm1036_vm1, %v1128_v15, %v1136_v22 }
 0x128   : > { %v823_v44 = vpop.f32.mrf.mxu2  ;;  %v1129_v58 = vsel %vm1036_vm1, %v1127_v1, %v1128_v15  ;;  %v1145_v15 = vrot.slane %v3237_v59, 2 }
 0x129   : > { %v824_v46 = vadd.f32 %v823_v44, %v759_v56  ;;  %v888_v2 = vpop.f32.mrf.mxu3 }
 0x12a   : > { %v761_v50 = vpop.f32.mrf.mxu1 }
 0x12b   : > { %v889_v9 = vadd.f32 %v888_v2, %v824_v46  ;;  %v953_v12 = vpop.f32.mrf.mxu0  ;;  %v762_v21 = vadd.f32 %v761_v50, %v2914_v5  ;;  %v1139_v2 = vsel %vm1036_vm1, %v1131_v36, %v1138_v4  ;;  %v1135_v50 = vsel %vm1036_vm1, %v1133_v14, %v1134_v55  ;;  %v3243_v4 = vld [vmem:[#allocation16_spill] sm:$0xff] }
 0x12c   : > { %v1149_v14 = vrot.slane %v3243_v4, 2 }
 0x12d   : > { %v3067_v61 = vadd.f32 %v953_v12, %v889_v9  ;;  %1020 = vmatmul.f32.gmra.mxu1 %v3226_v23  ;;  %1303 = vmatmul.f32.gmra.mxu2 %v1122_v8  ;;  %v1969_v9 = vld [vmem:[%s2111_s29 + $0x1f8] sm:$0xff] }
 0x12e   : > { %1368 = vmatmul.f32.gmra.mxu3 %v1124_v27  ;;  %1430 = vmatmul.f32.gmra.mxu0 %v1120_v19  ;;  %v1142_v12 = vrot.slane %v1969_v9, 2  ;;  %v1970_v27 = vld [vmem:[%s2111_s29 + $0x210] sm:$0xff] }
 0x12f   : > { %v1143_v19 = vrot.slane %v1970_v27, 2 }
 0x130   : > { %v826_v10 = vpop.f32.mrf.mxu2 }
 0x131   : > { %v827_v40 = vadd.f32 %v826_v10, %v762_v21  ;;  %v891_v62 = vpop.f32.mrf.mxu3  ;;  %v3238_v21 = vld [vmem:[#allocation14_spill] sm:$0xff] }
 0x132   : > { %v764_v13 = vpop.f32.mrf.mxu1  ;;  %v1146_v30 = vrot.slane %v3238_v21, 2 }
 0x133   : > { %v892_v0 = vadd.f32 %v891_v62, %v827_v40  ;;  %v956_v25 = vpop.f32.mrf.mxu0  ;;  %v765_v20 = vadd.f32 %v764_v13, %v3233_v48  ;;  %v1144_v40 = vsel %vm1036_vm1, %v1142_v12, %v1143_v19  ;;  %v3242_v48 = vld [vmem:[#allocation18_spill] sm:$0xff]  ;;  %v3245_v12 = vld [vmem:[#allocation19_spill] sm:$0xff] }
 0x134   : > { %v1155_v27 = vrot.slane %v3245_v12, 2 }
 0x135   : > { %v3079_v5 = vadd.f32 %v956_v25, %v892_v0  ;;  %1023 = vmatmul.f32.gmra.mxu1 %v3232_v63  ;;  %1306 = vmatmul.f32.gmra.mxu2 %v1129_v58  ;;  %v1147_v58 = vsel %vm1036_vm1, %v1145_v15, %v1146_v30  ;;  %v1141_v0 = vsel %vm1036_vm1, %v1134_v55, %v1140_v42 }
 0x136   : > { %1371 = vmatmul.f32.gmra.mxu3 %v1132_v49  ;;  %1433 = vmatmul.f32.gmra.mxu0 %v1126_v32  ;;  %v3240_v49 = vld [vmem:[#allocation15_spill] sm:$0xff] }
 0x137   : > { %v1971_v32 = vld [vmem:[%s2111_s29 + $0x228] sm:$0x3]  ;;  %v1148_v53 = vrot.slane %v3240_v49, 2  ;;  %s1712_s29 = sshll.u32 %s3259_s23, 1 }
 0x138   : > { %v829_v56 = vpop.f32.mrf.mxu2  ;;  %v1151_v63 = vrot.slane %v1971_v32, 2  ;;  %s224_s26 = sadd.s32 %s1713_s25, %s1712_s29 }
 0x139   : > { %v830_v29 = vadd.f32 %v829_v56, %v765_v20  ;;  %v894_v16 = vpop.f32.mrf.mxu3  ;;  %v1153_v20 = vrot.slane %v3242_v48, 2  ;;  %s1714_s27 = sshll.u32 %s224_s26, 2 }
 0x13a   : > { %v767_v23 = vpop.f32.mrf.mxu1  ;;  %s3130_s30 = scalar_lea.vmem %s3183_s2, %s1714_s27 }
 0x13b   : > { %v895_v44 = vadd.f32 %v894_v16, %v830_v29  ;;  %v959_v46 = vpop.f32.mrf.mxu0  ;;  %v768_v1 = vadd.f32 %v767_v23, %v3236_v57  ;;  %v1152_v16 = vsel %vm1036_vm1, %v1143_v19, %v1151_v63 }
 0x13d   : > { %v3090_v8 = vadd.f32 %v959_v46, %v895_v44  ;;  %1026 = vmatmul.f32.gmra.mxu1 %v3235_v41  ;;  %1309 = vmatmul.f32.gmra.mxu2 %v1137_v33  ;;  %v1154_v44 = vsel %vm1036_vm1, %v1146_v30, %v1153_v20  ;;  %v1150_v46 = vsel %vm1036_vm1, %v1148_v53, %v1149_v14 }
 0x13e   : > { %1374 = vmatmul.f32.gmra.mxu3 %v1139_v2  ;;  %1436 = vmatmul.f32.gmra.mxu0 %v1135_v50  ;;  %v3244_v50 = vld [vmem:[#allocation21_spill] sm:$0xff]  ;;  %v1156_v30 = vsel %vm1036_vm1, %v1149_v14, %v1155_v27  ;;  %v933_v27 = vadd.f32 %v2977_v45, %v2975_v38 }
 0x140   : > { %v832_v36 = vpop.f32.mrf.mxu2 }
 0x141   : > { %v833_v51 = vadd.f32 %v832_v36, %v768_v1  ;;  %v897_v39 = vpop.f32.mrf.mxu3 }
 0x142   : > { %v770_v10 = vpop.f32.mrf.mxu1 }
 0x143   : > { %v898_v62 = vadd.f32 %v897_v39, %v833_v51  ;;  %v962_v13 = vpop.f32.mrf.mxu0  ;;  %v771_v22 = vadd.f32 %v770_v10, %v3241_v43 }
 0x145   : > { %v3102_v25 = vadd.f32 %v962_v13, %v898_v62  ;;  %1029 = vmatmul.f32.gmra.mxu1 %v3240_v49  ;;  %1312 = vmatmul.f32.gmra.mxu2 %v1144_v40  ;;  %v924_v40 = vadd.f32 %v2936_v60, %v2934_v6 }
 0x146   : > { %1377 = vmatmul.f32.gmra.mxu3 %v1147_v58  ;;  %1439 = vmatmul.f32.gmra.mxu0 %v1141_v0  ;;  %v927_v0 = vadd.f32 %v2950_v17, %v2948_v34 }
 0x148   : > { %v835_v41 = vpop.f32.mrf.mxu2 }
 0x149   : > { %v836_v56 = vadd.f32 %v835_v41, %v771_v22  ;;  %v900_v55 = vpop.f32.mrf.mxu3  ;;  %v930_v41 = vadd.f32 %v2963_v24, %v2961_v18 }
 0x14a   : > { %v773_v29 = vpop.f32.mrf.mxu1 }
 0x14b   : > { %v901_v23 = vadd.f32 %v900_v55, %v836_v56  ;;  %v965_v33 = vpop.f32.mrf.mxu0  ;;  %v774_v9 = vadd.f32 %v773_v29, %v3244_v50 }
 0x14d   : > { %v3113_v2 = vadd.f32 %v965_v33, %v901_v23  ;;  %1032 = vmatmul.f32.gmra.mxu1 %v3243_v4  ;;  %1315 = vmatmul.f32.gmra.mxu2 %v1152_v16 }
 0x14e   : > { %1380 = vmatmul.f32.gmra.mxu3 %v1154_v44  ;;  %1442 = vmatmul.f32.gmra.mxu0 %v1150_v46 }
 0x150   : > { %v838_v19 = vpop.f32.mrf.mxu2 }
 0x151   : > { %v839_v57 = vadd.f32 %v838_v19, %v774_v9  ;;  %v903_v1 = vpop.f32.mrf.mxu3 }
 0x152   : > { %v988_v59 = vpop.f32.mrf.mxu1 }
 0x153   : > { %v904_v15 = vadd.f32 %v903_v1, %v839_v57  ;;  %v968_v21 = vpop.f32.mrf.mxu0  ;;  %v989_v49 = vadd.f32 %v988_v59, %v924_v40 }
 0x155   : > { %v3119_v31 = vadd.f32 %v968_v21, %v904_v15 }
 0x156   : > { %1445 = vmatmul.f32.gmra.mxu0 %v1156_v30 }
 0x158   : > { %v1271_v42 = vpop.f32.mrf.mxu2 }
 0x159   : > { %v1336_v36 = vpop.f32.mrf.mxu3 }
 0x15a   : > { %v991_v51 = vpop.f32.mrf.mxu1  ;;  %v1337_v10 = vadd.f32 %v1336_v36, %v1271_v42 }
 0x15b   : > { %v1401_v39 = vpop.f32.mrf.mxu0  ;;  %v992_v22 = vadd.f32 %v991_v51, %v927_v0 }
 0x15c   : > { %v1402_v62 = vadd.f32 %v1401_v39, %v1337_v10  ;;  %v936_v39 = vadd.f32 %v2990_v35, %v2988_v11 }
 0x15e   : > { %v1449_v48 = vadd.f32 %v1402_v62, %v989_v49 }
 0x160   : > { %v1274_v13 = vpop.f32.mrf.mxu2  ;;  %v1518_v60 = vmul.f32 %v1449_v48, %v1449_v48 }
 0x161   : > { %v1339_v58 = vpop.f32.mrf.mxu3 }
 0x162   : > { %v1340_v32 = vadd.f32 %v1339_v58, %v1274_v13  ;;  %v994_v63 = vpop.f32.mrf.mxu1 }
 0x163   : > { %v1404_v43 = vpop.f32.mrf.mxu0  ;;  %v995_v23 = vadd.f32 %v994_v63, %v930_v41  ;;  %v942_v41 = vadd.f32 %v3017_v26, %v3015_v3 }
 0x164   : > { %v1405_v20 = vadd.f32 %v1404_v43, %v1340_v32  ;;  %v939_v43 = vadd.f32 %v3004_v37, %v3002_v7 }
 0x166   : > { %v1450_v53 = vadd.f32 %v1405_v20, %v992_v22 }
 0x168   : > { %v1818_v6 = vpack.c.bf16 %v1450_v53, %v1449_v48  ;;  %v1497_v4 = vadd.f32 %v1450_v53, %v1449_v48  ;;  %v1519_v14 = vmul.f32 %v1450_v53, %v1450_v53  ;;  %v1277_v34 = vpop.f32.mrf.mxu2 }
 0x169   : > { %v1342_v17 = vpop.f32.mrf.mxu3 }
 0x16a   : > { %1819 = vst [vmem:[%s3130_s30] sm:$0xff] %v1818_v6   ;;  %v1534_v56 = vadd.f32 %v1519_v14, %v1518_v60  ;;  %v1343_v55 = vadd.f32 %v1342_v17, %v1277_v34  ;;  %v997_v29 = vpop.f32.mrf.mxu1 }
 0x16b   : > { %v1407_v16 = vpop.f32.mrf.mxu0  ;;  %v998_v24 = vadd.f32 %v997_v29, %v933_v27 }
 0x16c   : > { %v1408_v33 = vadd.f32 %v1407_v16, %v1343_v55 }
 0x16e   : > { %v1451_v44 = vadd.f32 %v1408_v33, %v995_v23 }
 0x170   : > { %v1498_v46 = vadd.f32 %v1497_v4, %v1451_v44  ;;  %v1520_v50 = vmul.f32 %v1451_v44, %v1451_v44  ;;  %v1280_v9 = vpop.f32.mrf.mxu2 }
 0x171   : > { %v1345_v12 = vpop.f32.mrf.mxu3 }
 0x172   : > { %v1535_v19 = vadd.f32 %v1534_v56, %v1520_v50  ;;  %v1346_v57 = vadd.f32 %v1345_v12, %v1280_v9  ;;  %v1000_v1 = vpop.f32.mrf.mxu1  ;;  %v945_v9 = vadd.f32 %v3031_v54, %v3029_v47 }
 0x173   : > { %v1410_v18 = vpop.f32.mrf.mxu0  ;;  %v1001_v45 = vadd.f32 %v1000_v1, %v936_v39 }
 0x174   : > { %v1411_v59 = vadd.f32 %v1410_v18, %v1346_v57 }
 0x176   : > { %v1452_v15 = vadd.f32 %v1411_v59, %v998_v24 }
 0x178   : > { %v1823_v21 = vpack.c.bf16 %v1452_v15, %v1451_v44  ;;  %v1499_v30 = vadd.f32 %v1498_v46, %v1452_v15  ;;  %v1521_v42 = vmul.f32 %v1452_v15, %v1452_v15  ;;  %v1283_v36 = vpop.f32.mrf.mxu2 }
 0x179   : > { %v1348_v51 = vpop.f32.mrf.mxu3 }
 0x17a   : > { %1855 = vst [vmem:[%s3130_s30 + $0x8] sm:$0xff] %v1823_v21   ;;  %v1536_v10 = vadd.f32 %v1535_v19, %v1521_v42  ;;  %v1349_v40 = vadd.f32 %v1348_v51, %v1283_v36  ;;  %v1003_v62 = vpop.f32.mrf.mxu1 }
 0x17b   : > { %v1413_v38 = vpop.f32.mrf.mxu0  ;;  %v1004_v35 = vadd.f32 %v1003_v62, %v939_v43 }
 0x17c   : > { %v1414_v13 = vadd.f32 %v1413_v38, %v1349_v40 }
 0x17e   : > { %v1453_v58 = vadd.f32 %v1414_v13, %v1001_v45 }
 0x180   : > { %v1500_v0 = vadd.f32 %v1499_v30, %v1453_v58  ;;  %v1522_v49 = vmul.f32 %v1453_v58, %v1453_v58  ;;  %v1286_v32 = vpop.f32.mrf.mxu2 }
 0x181   : > { %v1351_v63 = vpop.f32.mrf.mxu3 }
 0x182   : > { %v1537_v22 = vadd.f32 %v1536_v10, %v1522_v49  ;;  %v1352_v48 = vadd.f32 %v1351_v63, %v1286_v32  ;;  %v1006_v20 = vpop.f32.mrf.mxu1 }
 0x183   : > { %v1416_v11 = vpop.f32.mrf.mxu0  ;;  %v1007_v37 = vadd.f32 %v1006_v20, %v942_v41 }
 0x184   : > { %v1417_v53 = vadd.f32 %v1416_v11, %v1352_v48 }
 0x186   : > { %v1454_v60 = vadd.f32 %v1417_v53, %v1004_v35 }
 0x188   : > { %v1828_v6 = vpack.c.bf16 %v1454_v60, %v1453_v58  ;;  %v1501_v4 = vadd.f32 %v1500_v0, %v1454_v60  ;;  %v1523_v14 = vmul.f32 %v1454_v60, %v1454_v60  ;;  %v1289_v34 = vpop.f32.mrf.mxu2 }
 0x189   : > { %v1354_v17 = vpop.f32.mrf.mxu3 }
 0x18a   : > { %1856 = vst [vmem:[%s3130_s30 + $0x10] sm:$0xff] %v1828_v6   ;;  %v1538_v56 = vadd.f32 %v1537_v22, %v1523_v14  ;;  %v1355_v55 = vadd.f32 %v1354_v17, %v1289_v34  ;;  %v1009_v29 = vpop.f32.mrf.mxu1 }
 0x18b   : > { %v1419_v7 = vpop.f32.mrf.mxu0  ;;  %v1010_v26 = vadd.f32 %v1009_v29, %v945_v9 }
 0x18c   : > { %v1420_v16 = vadd.f32 %v1419_v7, %v1355_v55 }
 0x18e   : > { %v1455_v23 = vadd.f32 %v1420_v16, %v1007_v37 }
 0x190   : > { %v1502_v33 = vadd.f32 %v1501_v4, %v1455_v23  ;;  %v1524_v44 = vmul.f32 %v1455_v23, %v1455_v23  ;;  %v1292_v46 = vpop.f32.mrf.mxu2 }
 0x191   : > { %v1357_v50 = vpop.f32.mrf.mxu3 }
 0x192   : > { %v1539_v12 = vadd.f32 %v1538_v56, %v1524_v44  ;;  %v1358_v27 = vadd.f32 %v1357_v50, %v1292_v46  ;;  %v1012_v19 = vpop.f32.mrf.mxu1 }
 0x193   : > { %v1422_v3 = vpop.f32.mrf.mxu0  ;;  %v1013_v39 = vadd.f32 %v1012_v19, %v3044_v52 }
 0x194   : > { %v1423_v57 = vadd.f32 %v1422_v3, %v1358_v27 }
 0x196   : > { %v1456_v1 = vadd.f32 %v1423_v57, %v1010_v26 }
 0x198   : > { %v1833_v18 = vpack.c.bf16 %v1456_v1, %v1455_v23  ;;  %v1503_v24 = vadd.f32 %v1502_v33, %v1456_v1  ;;  %v1525_v59 = vmul.f32 %v1456_v1, %v1456_v1  ;;  %v1295_v15 = vpop.f32.mrf.mxu2 }
 0x199   : > { %v1360_v21 = vpop.f32.mrf.mxu3 }
 0x19a   : > { %1857 = vst [vmem:[%s3130_s30 + $0x18] sm:$0xff] %v1833_v18   ;;  %v1540_v30 = vadd.f32 %v1539_v12, %v1525_v59  ;;  %v1361_v42 = vadd.f32 %v1360_v21, %v1295_v15  ;;  %v1015_v36 = vpop.f32.mrf.mxu1 }
 0x19b   : > { %v1425_v51 = vpop.f32.mrf.mxu0  ;;  %v1016_v49 = vadd.f32 %v1015_v36, %v3056_v28 }
 0x19c   : > { %v1426_v47 = vadd.f32 %v1425_v51, %v1361_v42 }
 0x19e   : > { %v1457_v54 = vadd.f32 %v1426_v47, %v1013_v39 }
 0x1a0   : > { %v1504_v10 = vadd.f32 %v1503_v24, %v1457_v54  ;;  %v1526_v40 = vmul.f32 %v1457_v54, %v1457_v54  ;;  %v1298_v62 = vpop.f32.mrf.mxu2 }
 0x1a1   : > { %v1363_v38 = vpop.f32.mrf.mxu3 }
 0x1a2   : > { %v1541_v45 = vadd.f32 %v1540_v30, %v1526_v40  ;;  %v1364_v13 = vadd.f32 %v1363_v38, %v1298_v62  ;;  %v1018_v58 = vpop.f32.mrf.mxu1 }
 0x1a3   : > { %v1428_v0 = vpop.f32.mrf.mxu0  ;;  %v1019_v6 = vadd.f32 %v1018_v58, %v3067_v61 }
 0x1a4   : > { %v1429_v32 = vadd.f32 %v1428_v0, %v1364_v13 }
 0x1a6   : > { %v1458_v63 = vadd.f32 %v1429_v32, %v1016_v49 }
 0x1a8   : > { %v1838_v43 = vpack.c.bf16 %v1458_v63, %v1457_v54  ;;  %v1505_v22 = vadd.f32 %v1504_v10, %v1458_v63  ;;  %v1527_v48 = vmul.f32 %v1458_v63, %v1458_v63  ;;  %v1301_v20 = vpop.f32.mrf.mxu2 }
 0x1a9   : > { %v1366_v52 = vpop.f32.mrf.mxu3 }
 0x1aa   : > { %1858 = vst [vmem:[%s3130_s30 + $0x20] sm:$0xff] %v1838_v43   ;;  %v1542_v11 = vadd.f32 %v1541_v45, %v1527_v48  ;;  %v1367_v35 = vadd.f32 %v1366_v52, %v1301_v20  ;;  %v1021_v53 = vpop.f32.mrf.mxu1 }
 0x1ab   : > { %v1431_v60 = vpop.f32.mrf.mxu0  ;;  %v1022_v37 = vadd.f32 %v1021_v53, %v3079_v5 }
 0x1ac   : > { %v1432_v4 = vadd.f32 %v1431_v60, %v1367_v35 }
 0x1ae   : > { %v1459_v14 = vadd.f32 %v1432_v4, %v1019_v6 }
 0x1b0   : > { %v1506_v34 = vadd.f32 %v1505_v22, %v1459_v14  ;;  %v1528_v17 = vmul.f32 %v1459_v14, %v1459_v14  ;;  %v1304_v28 = vpop.f32.mrf.mxu2 }
 0x1b1   : > { %v1369_v41 = vpop.f32.mrf.mxu3 }
 0x1b2   : > { %v1543_v56 = vadd.f32 %v1542_v11, %v1528_v17  ;;  %v1370_v55 = vadd.f32 %v1369_v41, %v1304_v28  ;;  %v1024_v29 = vpop.f32.mrf.mxu1 }
 0x1b3   : > { %v1434_v7 = vpop.f32.mrf.mxu0  ;;  %v1025_v19 = vadd.f32 %v1024_v29, %v3090_v8 }
 0x1b4   : > { %v1435_v16 = vadd.f32 %v1434_v7, %v1370_v55 }
 0x1b6   : > { %v1460_v23 = vadd.f32 %v1435_v16, %v1022_v37 }
 0x1b8   : > { %v1843_v33 = vpack.c.bf16 %v1460_v23, %v1459_v14  ;;  %v1507_v44 = vadd.f32 %v1506_v34, %v1460_v23  ;;  %v1529_v46 = vmul.f32 %v1460_v23, %v1460_v23  ;;  %v1307_v50 = vpop.f32.mrf.mxu2 }
 0x1b9   : > { %v1372_v61 = vpop.f32.mrf.mxu3 }
 0x1ba   : > { %1859 = vst [vmem:[%s3130_s30 + $0x28] sm:$0xff] %v1843_v33   ;;  %v1544_v9 = vadd.f32 %v1543_v56, %v1529_v46  ;;  %v1373_v12 = vadd.f32 %v1372_v61, %v1307_v50  ;;  %v1027_v26 = vpop.f32.mrf.mxu1 }
 0x1bb   : > { %v1437_v27 = vpop.f32.mrf.mxu0  ;;  %v1028_v30 = vadd.f32 %v1027_v26, %v3102_v25 }
 0x1bc   : > { %v1438_v3 = vadd.f32 %v1437_v27, %v1373_v12 }
 0x1be   : > { %v1461_v57 = vadd.f32 %v1438_v3, %v1025_v19 }
 0x1c0   : > { %v1508_v1 = vadd.f32 %v1507_v44, %v1461_v57  ;;  %v1530_v18 = vmul.f32 %v1461_v57, %v1461_v57  ;;  %v1310_v5 = vpop.f32.mrf.mxu2 }
 0x1c1   : > { %v1375_v24 = vpop.f32.mrf.mxu3 }
 0x1c2   : > { %v1545_v59 = vadd.f32 %v1544_v9, %v1530_v18  ;;  %v1376_v15 = vadd.f32 %v1375_v24, %v1310_v5  ;;  %v1030_v51 = vpop.f32.mrf.mxu1 }
 0x1c3   : > { %v1440_v21 = vpop.f32.mrf.mxu0  ;;  %v1031_v45 = vadd.f32 %v1030_v51, %v3113_v2 }
 0x1c4   : > { %v1441_v42 = vadd.f32 %v1440_v21, %v1376_v15 }
 0x1c6   : > { %v1462_v36 = vadd.f32 %v1441_v42, %v1028_v30 }
 0x1c8   : > { %v1848_v39 = vpack.c.bf16 %v1462_v36, %v1461_v57  ;;  %v1509_v47 = vadd.f32 %v1508_v1, %v1462_v36  ;;  %v1531_v54 = vmul.f32 %v1462_v36, %v1462_v36  ;;  %v1313_v8 = vpop.f32.mrf.mxu2 }
 0x1c9   : > { %v1378_v10 = vpop.f32.mrf.mxu3 }
 0x1ca   : > { %1860 = vst [vmem:[%s3130_s30 + $0x30] sm:$0xff] %v1848_v39   ;;  %v1546_v40 = vadd.f32 %v1545_v59, %v1531_v54  ;;  %v1379_v62 = vadd.f32 %v1378_v10, %v1313_v8  ;;  %v1033_v32 = vpop.f32.mrf.mxu1 }
 0x1cb   : > { %v1443_v38 = vpop.f32.mrf.mxu0  ;;  %v1034_v20 = vadd.f32 %v1033_v32, %v3119_v31 }
 0x1cc   : > { %v1444_v13 = vadd.f32 %v1443_v38, %v1379_v62 }
 0x1ce   : > { %v1463_v58 = vadd.f32 %v1444_v13, %v1031_v45 }
 0x1d0   : > { %v1510_v0 = vadd.f32 %v1509_v47, %v1463_v58  ;;  %v1532_v25 = vmul.f32 %v1463_v58, %v1463_v58  ;;  %v1316_v49 = vpop.f32.mrf.mxu2 }
 0x1d1   : > { %v1381_v63 = vpop.f32.mrf.mxu3 }
 0x1d2   : > { %v1547_v43 = vadd.f32 %v1546_v40, %v1532_v25  ;;  %v1382_v22 = vadd.f32 %v1381_v63, %v1316_v49 }
 0x1d3   : > { %v1446_v48 = vpop.f32.mrf.mxu0 }
 0x1d4   : > { %v1447_v52 = vadd.f32 %v1446_v48, %v1382_v22 }
 0x1d6   : > { %v1464_v11 = vadd.f32 %v1447_v52, %v1034_v20 }
 0x1d8   : > { %v1853_v35 = vpack.c.bf16 %v1464_v11, %v1463_v58  ;;  %v1511_v2 = vadd.f32 %v1510_v0, %v1464_v11  ;;  %v1533_v53 = vmul.f32 %v1464_v11, %v1464_v11 }
 0x1da   : > { %1861 = vst [vmem:[%s3130_s30 + $0x38] sm:$0xff] %v1853_v35   ;;  %v1512_v60 = vrot.slane %v1511_v2, 4  ;;  %v1548_v6 = vadd.f32 %v1547_v43, %v1533_v53 }
 0x1dc   : > { %v1513_v4 = vadd.f32 %v1512_v60, %v1511_v2  ;;  %v1549_v14 = vrot.slane %v1548_v6, 4 }
 0x1de   : > { %v1514_v34 = vrot.slane %v1513_v4, 2  ;;  %v1550_v17 = vadd.f32 %v1549_v14, %v1548_v6 }
 0x1e0   : > { %v1515_v28 = vadd.f32 %v1514_v34, %v1513_v4  ;;  %v1551_v41 = vrot.slane %v1550_v17, 2 }
 0x1e2   : > { %v1516_v56 = vrot.slane %v1515_v28, 1  ;;  %v1552_v31 = vadd.f32 %v1551_v41, %v1550_v17 }
 0x1e4   : > { %v1553_v55 = vrot.slane %v1552_v31, 1  ;;  %v1517_v29 = vadd.f32 %v1516_v56, %v1515_v28 }
 0x1e6   : > { %v1554_v7 = vadd.f32 %v1553_v55, %v1552_v31 }
 0x1e8   : > { %v1556_v37 = vsel %vm1555_vm2, %v1517_v29, %v1554_v7 }
 0x1e9   : > { %1557 = vst [vmem:[%s235_s9] sm:$0x3] %v1556_v37 }
 0x1ea PF: > { %s14_s16 = sadd.s32 1, %s2010_s16   ;;  %s3246_s12 = smov %s2002_s14 }
 0x1eb   : > { %p11_p8 = scmp.ge.s32.totalorder %s14_s16, 6   ;;  %s3247_s13 = smov %s2006_s15 }
 0x1ec   : > { %s3248_s14 = smov %s3251_s17  ;;  %s3249_s15 = smov %s3255_s18 }
 0x1ed   :  { %13 = sbr.rel (!%p11_p8) target bundleno = 3 (0x3), region = 72 }

</bundles_post_ra>
